<compile_context>
chip_gen: v7x
topology: tpu7x:2x2x1
jax: 0.10.0
libtpu: 0.0.40
codegen_flags: <defaults>
</compile_context>

<pallas_src>
import functools

import jax
import jax.numpy as jnp
import numpy as np
from jax.experimental import pallas as pl
from jax.experimental.pallas import tpu as pltpu


def _mm(a3, w2):
    """(bm, T, Cin) @ (Cin, Cout) -> (bm, T, Cout) with f32 accumulation (MXU)."""
    m, t, c = a3.shape
    out = jnp.dot(a3.reshape(m * t, c), w2, preferred_element_type=jnp.float32)
    return out.reshape(m, t, w2.shape[1])


def _msrb_kernel(groups, dilation, pad_a, t_len, c_in, c_out, nb,
                 has_downsample, compute_dtype, *refs):
    """One grid step: (block_m, T, c_in) -> (block_m, T, c_out).

    refs: x, w_group[0..ng-1], b_cat, [down_w, down_b], fuse_w, fuse_b,
          out, xpad(scratch), cat(scratch)
    groups: tuple of (lag_lo, lag_hi, n_live_branches); branches are ordered
            by descending kernel size so live columns are a prefix.
    """
    ng = len(groups)
    x_ref = refs[0]
    wg_refs = refs[1:1 + ng]
    b_cat_ref = refs[1 + ng]
    idx = 2 + ng
    if has_downsample:
        wd_ref, bd_ref = refs[idx], refs[idx + 1]
        idx += 2
    wf_ref, bf_ref = refs[idx], refs[idx + 1]
    o_ref = refs[idx + 2]
    xpad_ref = refs[idx + 3]
    cat_ref = refs[idx + 4]

    x = x_ref[...]                                     # (bm, T, c_in)
    bm = x.shape[0]
    max_lag = groups[-1][1] - 1

    # Causally left-padded activation in VMEM scratch.  The pad region is
    # re-zeroed every step (cheap: pad_a << T) so correctness does not depend
    # on which TensorCore executed grid step 0 when the axis is core-sharded.
    if max_lag > 0:
        if pad_a > 0:
            xpad_ref[:, :pad_a, :] = jnp.zeros((bm, pad_a, c_in), xpad_ref.dtype)
        xpad_ref[:, pad_a:, :] = x

    # One matmul per unique temporal lag, restricted to the live branch
    # columns for that lag (branches ordered by descending k => the live
    # columns are always a prefix of the implicit channel concat).
    for gi, (lo, hi, live) in enumerate(groups):
        wg_ref = wg_refs[gi]
        acc = None
        for j in range(lo, hi):
            if j == 0:
                xs = x
            else:
                start = pad_a - dilation * j           # static sublane offset
                xs = xpad_ref[:, start:start + t_len, :]
            p = _mm(xs, wg_ref[j - lo])
            acc = p if acc is None else acc + p
        width = live * c_out
        if gi == 0:                                    # first group is full width
            cat_ref[...] = acc
        else:
            cat_ref[:, :, :width] = cat_ref[:, :, :width] + acc

    # Branch biases + branch ReLU applied once to the implicit concat, then a
    # single fat 1x1 fuse matmul with contraction dim K = nb * c_out.
    h = jnp.maximum(cat_ref[...] + b_cat_ref[...], 0.0)
    fused = _mm(h.astype(compute_dtype), wf_ref[...]) + bf_ref[...]

    # Residual computed late to keep its (bm, T, c_out) f32 live range short.
    if has_downsample:
        residual = _mm(x_ref[...], wd_ref[...]) + bd_ref[...]
    else:
        residual = x_ref[...].astype(jnp.float32)

    o_ref[...] = jnp.maximum(fused + residual, 0.0).astype(o_ref.dtype)


def _pick_block_m(M, row_bytes, budget, hard_budget, min_steps=2, cap=2048):
    """Largest divisor of M whose working set fits the VMEM budget."""
    divs = sorted(d for d in range(1, min(M, cap) + 1) if M % d == 0)
    fits = [d for d in divs if d * row_bytes <= budget]
    if not fits:
        fits = [d for d in divs if d * row_bytes <= hard_budget]
    if not fits:
        return divs[0]
    best = max(fits)
    # Prefer >= min_steps grid steps (pipelining / megacore) with aligned tiles.
    multi = [d for d in fits if M // d >= min_steps and d % 8 == 0]
    if M // best < min_steps and multi:
        best = max(multi)
    return best


# --------------------------------------------------------------------------- #
# One-time parameter prep (hoisted out of the forward).
# --------------------------------------------------------------------------- #
def prepare_msrb_params(params, kernel_sizes=(3, 5, 7), dilation=1,
                        compute_dtype=jnp.bfloat16):
    ks = tuple(kernel_sizes)
    assert len(set(ks)) == len(ks), "kernel sizes must be distinct"
    nb = len(ks)
    ks_desc = tuple(sorted(ks, reverse=True))
    ks_asc = tuple(sorted(ks))
    c_in = params[f"w{ks[0]}"].shape[1]
    c_out = params[f"w{ks[0]}"].shape[2]

    # Group lags by how many branches are still live; within a group the live
    # branches are exactly ks_desc[:live].  Weight entry [j-lo] holds, for
    # each live branch k, its tap w_k[k-1-j] concatenated along the out dim.
    groups, w_groups = [], []
    lo = 0
    for gi, hi in enumerate(ks_asc):
        live = nb - gi
        lag_mats = []
        for j in range(lo, hi):
            cols = [params[f"w{k}"][k - 1 - j] for k in ks_desc[:live]]
            lag_mats.append(jnp.concatenate(cols, axis=1))
        w_groups.append(jnp.stack(lag_mats, axis=0).astype(compute_dtype))
        groups.append((lo, hi, live))
        lo = hi

    b_cat = jnp.concatenate(
        [params[f"b{k}"].reshape(1, 1, c_out) for k in ks_desc],
        axis=-1).astype(jnp.float32)

    # Re-group the fuse rows to match the descending branch order.
    fuse_rows = []
    for k in ks_desc:
        bi = ks.index(k)
        fuse_rows.append(params["fuse_w"][bi * c_out:(bi + 1) * c_out, :])
    fuse_w = jnp.concatenate(fuse_rows, axis=0).astype(compute_dtype)
    fuse_b = params["fuse_b"].reshape(1, 1, c_out).astype(jnp.float32)

    prepped = dict(kernel_sizes=ks, dilation=int(dilation), nb=nb,
                   c_in=int(c_in), c_out=int(c_out), groups=tuple(groups),
                   compute_dtype=compute_dtype, w_groups=list(w_groups),
                   b_cat=b_cat, fuse_w=fuse_w, fuse_b=fuse_b,
                   has_downsample=("down_w" in params))
    if prepped["has_downsample"]:
        prepped["down_w"] = params["down_w"].astype(compute_dtype)
        prepped["down_b"] = params["down_b"].reshape(1, 1, c_out).astype(jnp.float32)
    else:
        assert c_in == c_out, "identity residual requires c_in == c_out"
    return prepped


# --------------------------------------------------------------------------- #
# Channels-last (flat) block forward: (M, W, c_in) -> (M, W, c_out).
# --------------------------------------------------------------------------- #
def multi_scale_residual_block_flat(x_flat, prepped, *, block_m=None,
                                    out_dtype=jnp.float32,
                                    vmem_budget_frac=None):
    M, W, c_in = x_flat.shape
    assert c_in == prepped["c_in"]
    c_out, nb = prepped["c_out"], prepped["nb"]
    nbc = nb * c_out
    groups = prepped["groups"]
    dilation = prepped["dilation"]
    compute_dtype = prepped["compute_dtype"]
    cd = np.dtype(compute_dtype).itemsize
    od = np.dtype(out_dtype).itemsize

    # Keep the T (sublane) axis tile-aligned so the (bm, T, C) -> (bm*T, C)
    # reshapes inside the kernel stay free relayouts (8 for f32, 16 for bf16).
    sub = 8 if cd >= 4 else 8 * (4 // cd)
    w_pad = -(-W // sub) * sub
    x = x_flat.astype(compute_dtype)
    if w_pad != W:                       # right-pad; causal conv never reads it
        x = jnp.pad(x, ((0, 0), (0, w_pad - W), (0, 0)))

    max_k = groups[-1][1]
    left_pad = dilation * (max_k - 1)
    pad_a = (-(-left_pad // sub) * sub) if left_pad > 0 else 0

    inputs = [x] + list(prepped["w_groups"]) + [prepped["b_cat"]]
    if prepped["has_downsample"]:
        inputs += [prepped["down_w"], prepped["down_b"]]
    inputs += [prepped["fuse_w"], prepped["fuse_b"]]

    # ---- generation-aware tile sizing --------------------------------------
    try:
        vmem_cap = int(pltpu.get_tpu_info().vmem_capacity_bytes)
    except Exception:
        vmem_cap = 64 << 20                       # conservative fallback
    vmem_cap = max(32 << 20, min(vmem_cap, 128 << 20))   # clamp odd reports
    small_vmem = vmem_cap <= (64 << 20)           # v7x-like parts (2 TCs)
    if vmem_budget_frac is None:
        vmem_budget_frac = 0.30 if small_vmem else 0.50
    row_bytes = (2 * w_pad * c_in * cd            # double-buffered input tile
                 + 2 * w_pad * c_out * od         # double-buffered output tile
                 + (pad_a + w_pad) * c_in * cd    # padded VMEM scratch
                 + 2 * w_pad * nbc * 4            # concat scratch + f32 h
                 + w_pad * nbc * cd               # bf16 copy of h for fuse matmul
                 + 3 * w_pad * c_out * 4          # fused / residual / out temps
                 + 2 * w_pad * c_in * cd)         # shifted-slice temporaries
    budget = int(vmem_cap * vmem_budget_frac)
    hard_budget = int(vmem_cap * (0.55 if small_vmem else 0.70))
    min_steps = 4 if small_vmem else 2            # >= 2 steps per TensorCore
    if block_m is None:
        block_m = _pick_block_m(M, row_bytes, budget, hard_budget, min_steps)
    assert M % block_m == 0, "N*H must be divisible by block_m"
    weight_bytes = sum(int(np.prod(a.shape)) * a.dtype.itemsize for a in inputs[1:])
    cap_limit = min(int(vmem_cap * (0.72 if small_vmem else 0.80)), 100 << 20)
    vmem_limit = int(min(cap_limit,
                         max(32 << 20,
                             block_m * row_bytes + 2 * weight_bytes + (4 << 20))))

    def full_spec(a):
        return pl.BlockSpec(a.shape, lambda i, _n=a.ndim: (0,) * _n)

    in_specs = [pl.BlockSpec((block_m, w_pad, c_in), lambda i: (i, 0, 0))]
    in_specs += [full_spec(a) for a in inputs[1:]]

    kernel = functools.partial(_msrb_kernel, groups, dilation, pad_a, w_pad,
                               c_in, c_out, nb, prepped["has_downsample"],
                               compute_dtype)

    # NOTE: output keeps (W, c_out) trailing dims; for the real TCN blocks
    # (c_out >= 128) stores are lane-dense already.
    out = pl.pallas_call(
        kernel,
        grid=(M // block_m,),
        out_shape=jax.ShapeDtypeStruct((M, w_pad, c_out), out_dtype),
        in_specs=in_specs,
        out_specs=pl.BlockSpec((block_m, w_pad, c_out), lambda i: (i, 0, 0)),
        scratch_shapes=[
            pltpu.VMEM((block_m, pad_a + w_pad, c_in), compute_dtype),
            pltpu.VMEM((block_m, w_pad, nbc), jnp.float32),
        ],
        compiler_params=pltpu.CompilerParams(
            dimension_semantics=("parallel",),
            vmem_limit_bytes=vmem_limit),
    )(*inputs)

    if w_pad != W:
        out = out[:, :W, :]
    return out


def multi_scale_residual_block(x_nchw, params, kernel_sizes=(3, 5, 7),
                               dilation=1, block_m=None,
                               compute_dtype=jnp.bfloat16,
                               out_dtype=jnp.float32, vmem_budget_frac=None):
    """NCHW convenience wrapper around the channels-last Pallas block."""
    prepped = prepare_msrb_params(params, kernel_sizes, dilation, compute_dtype)
    N, c_in, H, W = x_nchw.shape
    x = jnp.transpose(x_nchw, (0, 2, 3, 1)).reshape(N * H, W, c_in)
    out = multi_scale_residual_block_flat(x, prepped, block_m=block_m,
                                          out_dtype=out_dtype,
                                          vmem_budget_frac=vmem_budget_frac)
    c_out = prepped["c_out"]
    return jnp.transpose(out.reshape(N, H, W, c_out), (0, 3, 1, 2)).astype(jnp.float32)


# --------------------------------------------------------------------------- #
# Pure-JAX reference mirroring the PyTorch forward (for verification).
# --------------------------------------------------------------------------- #
def reference(x_nchw, params, kernel_sizes, dilation):
    N, c_in, H, W = x_nchw.shape
    x = jnp.transpose(x_nchw, (0, 2, 3, 1))            # NHWC
    if "down_w" in params:
        residual = (jnp.einsum("nhwc,cd->nhwd", x, params["down_w"])
                    + params["down_b"].reshape(-1))
    else:
        residual = x
    branch_outs = []
    for k in kernel_sizes:
        lp = dilation * (k - 1)
        xp = jnp.pad(x, ((0, 0), (0, 0), (lp, 0), (0, 0)))
        s = params[f"b{k}"].reshape(-1)
        for tap in range(k):
            xs = xp[:, :, tap * dilation: tap * dilation + W, :]
            s = s + jnp.einsum("nhwc,cd->nhwd", xs, params[f"w{k}"][tap])
        branch_outs.append(jnp.maximum(s, 0.0))
    cat = jnp.concatenate(branch_outs, axis=-1)
    out = (jnp.einsum("nhwc,cd->nhwd", cat, params["fuse_w"])
           + params["fuse_b"].reshape(-1))
    out = jnp.maximum(out + residual, 0.0)
    return jnp.transpose(out, (0, 3, 1, 2))


def init_params(key, c_in, c_out, kernel_sizes):
    """Deterministic synthetic parameters (shapes per the module __init__)."""
    params = {}
    keys = jax.random.split(key, 2 * len(kernel_sizes) + 4)
    ki = 0
    for k in kernel_sizes:
        params[f"w{k}"] = 0.1 * jax.random.normal(keys[ki], (k, c_in, c_out),
                                                  jnp.float32); ki += 1
        params[f"b{k}"] = 0.1 * jax.random.normal(keys[ki], (1, 1, c_out),
                                                  jnp.float32); ki += 1
    if c_in != c_out:
        params["down_w"] = 0.1 * jax.random.normal(keys[ki], (c_in, c_out),
                                                   jnp.float32); ki += 1
        params["down_b"] = 0.1 * jax.random.normal(keys[ki], (1, 1, c_out),
                                                   jnp.float32); ki += 1
    params["fuse_w"] = 0.1 * jax.random.normal(
        keys[ki], (len(kernel_sizes) * c_out, c_out), jnp.float32); ki += 1
    params["fuse_b"] = 0.1 * jax.random.normal(keys[ki], (1, 1, c_out),
                                               jnp.float32)
    return params


# --------------------------------------------------------------------------- #
# Full TCN forward (initial conv -> 4 MSRB blocks -> adaptive pool).
# TODO(synk): the initial 1x3 "same" conv, AdaptiveAvgPool2d((1,256)) and the
# unused nn.Linear remain plain XLA ops; the Pallas kernel covers the four
# MultiScaleResidualBlocks, which dominate the compute.
# --------------------------------------------------------------------------- #
_BLOCK_DILATIONS = (("block1", 1), ("block2", 2), ("block3", 4), ("block4", 8))


def _initial_conv_nhwc(x_nhwc, w, b):
    N, H, W, C = x_nhwc.shape
    xp = jnp.pad(x_nhwc, ((0, 0), (0, 0), (1, 1), (0, 0)))
    out = b.reshape(1, 1, 1, -1)
    for tap in range(3):
        out = out + jnp.einsum("nhwc,cd->nhwd", xp[:, :, tap:tap + W, :], w[tap])
    return jnp.maximum(out, 0.0)


def _initial_conv_nchw(x_nchw, w, b):
    out = _initial_conv_nhwc(jnp.transpose(x_nchw, (0, 2, 3, 1)), w, b)
    return jnp.transpose(out, (0, 3, 1, 2))


def _adaptive_pool_matrix(W, out_w):
    P = np.zeros((W, out_w), np.float32)
    for i in range(out_w):
        s = (i * W) // out_w
        e = -(-((i + 1) * W) // out_w)
        P[s:e, i] = 1.0 / (e - s)
    return jnp.asarray(P)


def _adaptive_avg_pool_nhwc(x_nhwc, out_w=256):
    """AdaptiveAvgPool2d((1, out_w)) + squeeze(2): NHWC in, (N, C, out_w) out."""
    N, H, W, C = x_nhwc.shape
    xm = jnp.mean(x_nhwc, axis=1)                          # (N, W, C)
    return jnp.einsum("nwc,wo->nco", xm, _adaptive_pool_matrix(W, out_w))


def _adaptive_avg_pool_nchw(x_nchw, out_w=256):
    return _adaptive_avg_pool_nhwc(jnp.transpose(x_nchw, (0, 2, 3, 1)), out_w)


def prepare_tcn_params(tp, kernel_sizes=(3, 5, 7), compute_dtype=jnp.float32):
    """One-time weight prep for all blocks (hoisted out of the forward)."""
    blocks = {name: prepare_msrb_params(tp[name], kernel_sizes, dil, compute_dtype)
              for name, dil in _BLOCK_DILATIONS}
    return {"init_w": tp["init_w"], "init_b": tp["init_b"],
            "blocks": blocks, "compute_dtype": compute_dtype}


def tcn_forward(x_nchw, tp, use_pallas=True, compute_dtype=jnp.float32,
                kernel_sizes=(3, 5, 7), prepped=None):
    if not use_pallas:
        out = _initial_conv_nchw(x_nchw, tp["init_w"], tp["init_b"])
        for name, dil in _BLOCK_DILATIONS:
            out = reference(out, tp[name], kernel_sizes, dil)
        return _adaptive_avg_pool_nchw(out, 256)

    if prepped is None:
        prepped = prepare_tcn_params(tp, kernel_sizes, compute_dtype)
    compute_dtype = prepped["compute_dtype"]
    N, _, H, W = x_nchw.shape
    # Single NCHW -> channels-last transpose; everything stays (N*H, W, C).
    x = jnp.transpose(x_nchw, (0, 2, 3, 1))
    x = _initial_conv_nhwc(x, prepped["init_w"], prepped["init_b"])
    flat = x.reshape(N * H, W, x.shape[-1])
    names = [n for n, _ in _BLOCK_DILATIONS]
    for bi, name in enumerate(names):
        last = bi == len(names) - 1
        od = jnp.float32 if last else compute_dtype    # compact inter-block acts
        flat = multi_scale_residual_block_flat(flat, prepped["blocks"][name],
                                               out_dtype=od)
    c_out = flat.shape[-1]
    nhwc = flat.reshape(N, H, W, c_out).astype(jnp.float32)
    return _adaptive_avg_pool_nhwc(nhwc, 256)


def init_tcn_params(key, kernel_sizes=(3, 5, 7)):
    ks = jax.random.split(key, 6)
    p = {"init_w": 0.1 * jax.random.normal(ks[0], (3, 4, 16), jnp.float32),
         "init_b": 0.1 * jax.random.normal(ks[1], (16,), jnp.float32)}
    for i, (ci, co) in enumerate(((16, 32), (32, 64), (64, 128), (128, 256))):
        p[f"block{i + 1}"] = init_params(ks[2 + i], ci, co, kernel_sizes)
    return p


if __name__ == "__main__":
    key = jax.random.PRNGKey(0)
    kx1, kp1, kx2, kp2, kx3, kp3 = jax.random.split(key, 6)
    kernel_sizes = (3, 5, 7)

    # --- Test 1: MSRB with downsample residual, dilation=1 -------------------
    N, c_in, H, W = 2, 4, 4, 16
    c_out = 8
    x = jax.random.normal(kx1, (N, c_in, H, W), jnp.float32)
    params = init_params(kp1, c_in, c_out, kernel_sizes)
    ref = reference(x, params, kernel_sizes, 1)

    out_f32 = jax.block_until_ready(
        multi_scale_residual_block(x, params, kernel_sizes, 1,
                                   compute_dtype=jnp.float32))
    assert out_f32.shape == (N, c_out, H, W), out_f32.shape
    assert jnp.allclose(out_f32, ref, atol=1e-3, rtol=1e-3), "f32 mismatch"

    out_bf16 = jax.block_until_ready(
        multi_scale_residual_block(x, params, kernel_sizes, 1,
                                   compute_dtype=jnp.bfloat16))
    assert jnp.allclose(out_bf16, ref, atol=5e-2, rtol=5e-2), "bf16 mismatch"

    # --- Test 2: identity residual (c_in == c_out), dilation=2 ---------------
    x2 = jax.random.normal(kx2, (2, 8, 4, 16), jnp.float32)
    params2 = init_params(kp2, 8, 8, kernel_sizes)
    ref2 = reference(x2, params2, kernel_sizes, 2)
    out2 = jax.block_until_ready(
        multi_scale_residual_block(x2, params2, kernel_sizes, 2,
                                   compute_dtype=jnp.bfloat16))
    assert jnp.allclose(out2, ref2, atol=5e-2, rtol=5e-2), "dilation=2 mismatch"

    # --- Test 3: full TCN forward (channels 16->32->64->128->256) ------------
    x3 = jax.random.normal(kx3, (1, 4, 2, 16), jnp.float32)
    tp = init_tcn_params(kp3)
    prepped_f32 = prepare_tcn_params(tp, kernel_sizes, jnp.float32)  # hoisted prep
    tcn_out = jax.block_until_ready(
        tcn_forward(x3, tp, use_pallas=True, prepped=prepped_f32))
    tcn_ref = tcn_forward(x3, tp, use_pallas=False)
    assert tcn_out.shape == (1, 256, 256), tcn_out.shape
    assert jnp.allclose(tcn_out, tcn_ref, atol=1e-3, rtol=1e-3), "tcn mismatch"

    # --- Test 4: bf16 compute + bf16 inter-block activations (smoke run) -----
    prepped_bf16 = prepare_tcn_params(tp, kernel_sizes, jnp.bfloat16)
    tcn_bf16 = jax.block_until_ready(
        tcn_forward(x3, tp, use_pallas=True, prepped=prepped_bf16))
    assert tcn_bf16.shape == (1, 256, 256), tcn_bf16.shape

    print("KERNEL_OK")
</pallas_src>

<mosaic_0001>
module attributes {stable_mosaic.version = 11 : i64} {
  func.func @_msrb_kernel(%arg0: i32, %arg1: memref<8x16x4xf32, #tpu.memory_space<vmem>>, %arg2: memref<3x4x24xf32, #tpu.memory_space<vmem>>, %arg3: memref<2x4x16xf32, #tpu.memory_space<vmem>>, %arg4: memref<2x4x8xf32, #tpu.memory_space<vmem>>, %arg5: memref<1x1x24xf32, #tpu.memory_space<vmem>>, %arg6: memref<4x8xf32, #tpu.memory_space<vmem>>, %arg7: memref<1x1x8xf32, #tpu.memory_space<vmem>>, %arg8: memref<24x8xf32, #tpu.memory_space<vmem>>, %arg9: memref<1x1x8xf32, #tpu.memory_space<vmem>>, %arg10: memref<8x16x8xf32, #tpu.memory_space<vmem>>, %arg11: memref<8x24x4xf32, #tpu.memory_space<vmem>>, %arg12: memref<8x16x24xf32, #tpu.memory_space<vmem>>) attributes {dimension_semantics = [#tpu.dimension_semantics<parallel>], iteration_bounds = array<i64: 1>, scalar_prefetch = 0 : i64, scratch_operands = 2 : i64, tpu.core_type = #tpu.core_type<tc>, window_params = [{transform_indices = @transform_0, window_bounds = array<i64: 8, 16, 4>}, {pipeline_mode = #tpu.pipeline_mode<synchronous>, transform_indices = @transform_1, window_bounds = array<i64: 3, 4, 24>}, {pipeline_mode = #tpu.pipeline_mode<synchronous>, transform_indices = @transform_2, window_bounds = array<i64: 2, 4, 16>}, {pipeline_mode = #tpu.pipeline_mode<synchronous>, transform_indices = @transform_3, window_bounds = array<i64: 2, 4, 8>}, {pipeline_mode = #tpu.pipeline_mode<synchronous>, transform_indices = @transform_4, window_bounds = array<i64: 1, 1, 24>}, {pipeline_mode = #tpu.pipeline_mode<synchronous>, transform_indices = @transform_5, window_bounds = array<i64: 4, 8>}, {pipeline_mode = #tpu.pipeline_mode<synchronous>, transform_indices = @transform_6, window_bounds = array<i64: 1, 1, 8>}, {pipeline_mode = #tpu.pipeline_mode<synchronous>, transform_indices = @transform_7, window_bounds = array<i64: 24, 8>}, {pipeline_mode = #tpu.pipeline_mode<synchronous>, transform_indices = @transform_8, window_bounds = array<i64: 1, 1, 8>}, {transform_indices = @transform_9, window_bounds = array<i64: 8, 16, 8>}]} {
    %c0 = arith.constant 0 : index
    %c0_0 = arith.constant 0 : index
    %c0_1 = arith.constant 0 : index
    %0 = vector.load %arg1[%c0, %c0_0, %c0_1] : memref<8x16x4xf32, #tpu.memory_space<vmem>>, vector<8x16x4xf32>
    %cst = arith.constant 0.000000e+00 : f32
    %1 = vector.broadcast %cst : f32 to vector<8x8x4xf32>
    %c0_2 = arith.constant 0 : index
    %c0_3 = arith.constant 0 : index
    %c0_4 = arith.constant 0 : index
    %2 = vector.load %arg11[%c0_2, %c0_3, %c0_4] : memref<8x24x4xf32, #tpu.memory_space<vmem>>, vector<8x8x4xf32>
    tpu.vector_store %arg11[%c0_2, %c0_3, %c0_4], %1 {strides = array<i32>} : memref<8x24x4xf32, #tpu.memory_space<vmem>>, vector<8x8x4xf32>,
    %c0_5 = arith.constant 0 : index
    %c8 = arith.constant 8 : index
    %c0_6 = arith.constant 0 : index
    %3 = vector.load %arg11[%c0_5, %c8, %c0_6] : memref<8x24x4xf32, #tpu.memory_space<vmem>>, vector<8x16x4xf32>
    tpu.vector_store %arg11[%c0_5, %c8, %c0_6], %0 {strides = array<i32>} : memref<8x24x4xf32, #tpu.memory_space<vmem>>, vector<8x16x4xf32>,
    %c0_7 = arith.constant 0 : index
    %c0_8 = arith.constant 0 : index
    %c0_9 = arith.constant 0 : index
    %4 = vector.load %arg2[%c0_7, %c0_8, %c0_9] : memref<3x4x24xf32, #tpu.memory_space<vmem>>, vector<1x4x24xf32>
    %5 = vector.shape_cast %4 : vector<1x4x24xf32> to vector<4x24xf32>
    %6 = vector.shape_cast %0 : vector<8x16x4xf32> to vector<128x4xf32>
    %cst_10 = arith.constant dense<0.000000e+00> : vector<128x24xf32>
    %7 = tpu.matmul %6, %5, %cst_10 {dimension_numbers = #tpu.dot_dimension_numbers<[1], [0], [0], [1], [0, 0, 1, 1], [], []>} : vector<128x4xf32>, vector<4x24xf32>, vector<128x24xf32> -> vector<128x24xf32>
    %8 = vector.shape_cast %7 : vector<128x24xf32> to vector<8x16x24xf32>
    %c0_11 = arith.constant 0 : index
    %c7 = arith.constant 7 : index
    %c0_12 = arith.constant 0 : index
    %9 = vector.load %arg11[%c0_11, %c7, %c0_12] : memref<8x24x4xf32, #tpu.memory_space<vmem>>, vector<8x16x4xf32>
    %c1 = arith.constant 1 : index
    %c0_13 = arith.constant 0 : index
    %c0_14 = arith.constant 0 : index
    %10 = vector.load %arg2[%c1, %c0_13, %c0_14] : memref<3x4x24xf32, #tpu.memory_space<vmem>>, vector<1x4x24xf32>
    %11 = vector.shape_cast %10 : vector<1x4x24xf32> to vector<4x24xf32>
    %12 = vector.shape_cast %9 : vector<8x16x4xf32> to vector<128x4xf32>
    %cst_15 = arith.constant dense<0.000000e+00> : vector<128x24xf32>
    %13 = tpu.matmul %12, %11, %cst_15 {dimension_numbers = #tpu.dot_dimension_numbers<[1], [0], [0], [1], [0, 0, 1, 1], [], []>} : vector<128x4xf32>, vector<4x24xf32>, vector<128x24xf32> -> vector<128x24xf32>
    %14 = vector.shape_cast %13 : vector<128x24xf32> to vector<8x16x24xf32>
    %15 = arith.addf %8, %14 : vector<8x16x24xf32>
    %c0_16 = arith.constant 0 : index
    %c6 = arith.constant 6 : index
    %c0_17 = arith.constant 0 : index
    %16 = vector.load %arg11[%c0_16, %c6, %c0_17] : memref<8x24x4xf32, #tpu.memory_space<vmem>>, vector<8x16x4xf32>
    %c2 = arith.constant 2 : index
    %c0_18 = arith.constant 0 : index
    %c0_19 = arith.constant 0 : index
    %17 = vector.load %arg2[%c2, %c0_18, %c0_19] : memref<3x4x24xf32, #tpu.memory_space<vmem>>, vector<1x4x24xf32>
    %18 = vector.shape_cast %17 : vector<1x4x24xf32> to vector<4x24xf32>
    %19 = vector.shape_cast %16 : vector<8x16x4xf32> to vector<128x4xf32>
    %cst_20 = arith.constant dense<0.000000e+00> : vector<128x24xf32>
    %20 = tpu.matmul %19, %18, %cst_20 {dimension_numbers = #tpu.dot_dimension_numbers<[1], [0], [0], [1], [0, 0, 1, 1], [], []>} : vector<128x4xf32>, vector<4x24xf32>, vector<128x24xf32> -> vector<128x24xf32>
    %21 = vector.shape_cast %20 : vector<128x24xf32> to vector<8x16x24xf32>
    %22 = arith.addf %15, %21 : vector<8x16x24xf32>
    %c0_21 = arith.constant 0 : index
    %c0_22 = arith.constant 0 : index
    %c0_23 = arith.constant 0 : index
    %23 = vector.load %arg12[%c0_21, %c0_22, %c0_23] : memref<8x16x24xf32, #tpu.memory_space<vmem>>, vector<8x16x24xf32>
    tpu.vector_store %arg12[%c0_21, %c0_22, %c0_23], %22 {strides = array<i32>} : memref<8x16x24xf32, #tpu.memory_space<vmem>>, vector<8x16x24xf32>,
    %c0_24 = arith.constant 0 : index
    %c5 = arith.constant 5 : index
    %c0_25 = arith.constant 0 : index
    %24 = vector.load %arg11[%c0_24, %c5, %c0_25] : memref<8x24x4xf32, #tpu.memory_space<vmem>>, vector<8x16x4xf32>
    %c0_26 = arith.constant 0 : index
    %c0_27 = arith.constant 0 : index
    %c0_28 = arith.constant 0 : index
    %25 = vector.load %arg3[%c0_26, %c0_27, %c0_28] : memref<2x4x16xf32, #tpu.memory_space<vmem>>, vector<1x4x16xf32>
    %26 = vector.shape_cast %25 : vector<1x4x16xf32> to vector<4x16xf32>
    %27 = vector.shape_cast %24 : vector<8x16x4xf32> to vector<128x4xf32>
    %cst_29 = arith.constant dense<0.000000e+00> : vector<128x16xf32>
    %28 = tpu.matmul %27, %26, %cst_29 {dimension_numbers = #tpu.dot_dimension_numbers<[1], [0], [0], [1], [0, 0, 1, 1], [], []>} : vector<128x4xf32>, vector<4x16xf32>, vector<128x16xf32> -> vector<128x16xf32>
    %29 = vector.shape_cast %28 : vector<128x16xf32> to vector<8x16x16xf32>
    %c0_30 = arith.constant 0 : index
    %c4 = arith.constant 4 : index
    %c0_31 = arith.constant 0 : index
    %30 = vector.load %arg11[%c0_30, %c4, %c0_31] : memref<8x24x4xf32, #tpu.memory_space<vmem>>, vector<8x16x4xf32>
    %c1_32 = arith.constant 1 : index
    %c0_33 = arith.constant 0 : index
    %c0_34 = arith.constant 0 : index
    %31 = vector.load %arg3[%c1_32, %c0_33, %c0_34] : memref<2x4x16xf32, #tpu.memory_space<vmem>>, vector<1x4x16xf32>
    %32 = vector.shape_cast %31 : vector<1x4x16xf32> to vector<4x16xf32>
    %33 = vector.shape_cast %30 : vector<8x16x4xf32> to vector<128x4xf32>
    %cst_35 = arith.constant dense<0.000000e+00> : vector<128x16xf32>
    %34 = tpu.matmul %33, %32, %cst_35 {dimension_numbers = #tpu.dot_dimension_numbers<[1], [0], [0], [1], [0, 0, 1, 1], [], []>} : vector<128x4xf32>, vector<4x16xf32>, vector<128x16xf32> -> vector<128x16xf32>
    %35 = vector.shape_cast %34 : vector<128x16xf32> to vector<8x16x16xf32>
    %36 = arith.addf %29, %35 : vector<8x16x16xf32>
    %c0_36 = arith.constant 0 : index
    %c0_37 = arith.constant 0 : index
    %c0_38 = arith.constant 0 : index
    %37 = vector.load %arg12[%c0_36, %c0_37, %c0_38] : memref<8x16x24xf32, #tpu.memory_space<vmem>>, vector<8x16x16xf32>
    %38 = arith.addf %37, %36 : vector<8x16x16xf32>
    %c0_39 = arith.constant 0 : index
    %c0_40 = arith.constant 0 : index
    %c0_41 = arith.constant 0 : index
    %39 = vector.load %arg12[%c0_39, %c0_40, %c0_41] : memref<8x16x24xf32, #tpu.memory_space<vmem>>, vector<8x16x16xf32>
    tpu.vector_store %arg12[%c0_39, %c0_40, %c0_41], %38 {strides = array<i32>} : memref<8x16x24xf32, #tpu.memory_space<vmem>>, vector<8x16x16xf32>,
    %c0_42 = arith.constant 0 : index
    %c3 = arith.constant 3 : index
    %c0_43 = arith.constant 0 : index
    %40 = vector.load %arg11[%c0_42, %c3, %c0_43] : memref<8x24x4xf32, #tpu.memory_space<vmem>>, vector<8x16x4xf32>
    %c0_44 = arith.constant 0 : index
    %c0_45 = arith.constant 0 : index
    %c0_46 = arith.constant 0 : index
    %41 = vector.load %arg4[%c0_44, %c0_45, %c0_46] : memref<2x4x8xf32, #tpu.memory_space<vmem>>, vector<1x4x8xf32>
    %42 = vector.shape_cast %41 : vector<1x4x8xf32> to vector<4x8xf32>
    %43 = vector.shape_cast %40 : vector<8x16x4xf32> to vector<128x4xf32>
    %cst_47 = arith.constant dense<0.000000e+00> : vector<128x8xf32>
    %44 = tpu.matmul %43, %42, %cst_47 {dimension_numbers = #tpu.dot_dimension_numbers<[1], [0], [0], [1], [0, 0, 1, 1], [], []>} : vector<128x4xf32>, vector<4x8xf32>, vector<128x8xf32> -> vector<128x8xf32>
    %45 = vector.shape_cast %44 : vector<128x8xf32> to vector<8x16x8xf32>
    %c0_48 = arith.constant 0 : index
    %c2_49 = arith.constant 2 : index
    %c0_50 = arith.constant 0 : index
    %46 = vector.load %arg11[%c0_48, %c2_49, %c0_50] : memref<8x24x4xf32, #tpu.memory_space<vmem>>, vector<8x16x4xf32>
    %c1_51 = arith.constant 1 : index
    %c0_52 = arith.constant 0 : index
    %c0_53 = arith.constant 0 : index
    %47 = vector.load %arg4[%c1_51, %c0_52, %c0_53] : memref<2x4x8xf32, #tpu.memory_space<vmem>>, vector<1x4x8xf32>
    %48 = vector.shape_cast %47 : vector<1x4x8xf32> to vector<4x8xf32>
    %49 = vector.shape_cast %46 : vector<8x16x4xf32> to vector<128x4xf32>
    %cst_54 = arith.constant dense<0.000000e+00> : vector<128x8xf32>
    %50 = tpu.matmul %49, %48, %cst_54 {dimension_numbers = #tpu.dot_dimension_numbers<[1], [0], [0], [1], [0, 0, 1, 1], [], []>} : vector<128x4xf32>, vector<4x8xf32>, vector<128x8xf32> -> vector<128x8xf32>
    %51 = vector.shape_cast %50 : vector<128x8xf32> to vector<8x16x8xf32>
    %52 = arith.addf %45, %51 : vector<8x16x8xf32>
    %c0_55 = arith.constant 0 : index
    %c0_56 = arith.constant 0 : index
    %c0_57 = arith.constant 0 : index
    %53 = vector.load %arg12[%c0_55, %c0_56, %c0_57] : memref<8x16x24xf32, #tpu.memory_space<vmem>>, vector<8x16x8xf32>
    %54 = arith.addf %53, %52 : vector<8x16x8xf32>
    %c0_58 = arith.constant 0 : index
    %c0_59 = arith.constant 0 : index
    %c0_60 = arith.constant 0 : index
    %55 = vector.load %arg12[%c0_58, %c0_59, %c0_60] : memref<8x16x24xf32, #tpu.memory_space<vmem>>, vector<8x16x8xf32>
    tpu.vector_store %arg12[%c0_58, %c0_59, %c0_60], %54 {strides = array<i32>} : memref<8x16x24xf32, #tpu.memory_space<vmem>>, vector<8x16x8xf32>,
    %c0_61 = arith.constant 0 : index
    %c0_62 = arith.constant 0 : index
    %c0_63 = arith.constant 0 : index
    %56 = vector.load %arg12[%c0_61, %c0_62, %c0_63] : memref<8x16x24xf32, #tpu.memory_space<vmem>>, vector<8x16x24xf32>
    %c0_64 = arith.constant 0 : index
    %c0_65 = arith.constant 0 : index
    %c0_66 = arith.constant 0 : index
    %57 = vector.load %arg5[%c0_64, %c0_65, %c0_66] : memref<1x1x24xf32, #tpu.memory_space<vmem>>, vector<1x1x24xf32>
    %58 = vector.broadcast %57 : vector<1x1x24xf32> to vector<8x16x24xf32>
    %59 = arith.addf %56, %58 : vector<8x16x24xf32>
    %cst_67 = arith.constant 0.000000e+00 : f32
    %60 = vector.broadcast %cst_67 : f32 to vector<8x16x24xf32>
    %61 = arith.maximumf %59, %60 : vector<8x16x24xf32>
    %c0_68 = arith.constant 0 : index
    %c0_69 = arith.constant 0 : index
    %62 = vector.load %arg8[%c0_68, %c0_69] : memref<24x8xf32, #tpu.memory_space<vmem>>, vector<24x8xf32>
    %63 = vector.shape_cast %61 : vector<8x16x24xf32> to vector<128x24xf32>
    %cst_70 = arith.constant dense<0.000000e+00> : vector<128x8xf32>
    %64 = tpu.matmul %63, %62, %cst_70 {dimension_numbers = #tpu.dot_dimension_numbers<[1], [0], [0], [1], [0, 0, 1, 1], [], []>} : vector<128x24xf32>, vector<24x8xf32>, vector<128x8xf32> -> vector<128x8xf32>
    %65 = vector.shape_cast %64 : vector<128x8xf32> to vector<8x16x8xf32>
    %c0_71 = arith.constant 0 : index
    %c0_72 = arith.constant 0 : index
    %c0_73 = arith.constant 0 : index
    %66 = vector.load %arg9[%c0_71, %c0_72, %c0_73] : memref<1x1x8xf32, #tpu.memory_space<vmem>>, vector<1x1x8xf32>
    %67 = vector.broadcast %66 : vector<1x1x8xf32> to vector<8x16x8xf32>
    %68 = arith.addf %65, %67 : vector<8x16x8xf32>
    %c0_74 = arith.constant 0 : index
    %c0_75 = arith.constant 0 : index
    %c0_76 = arith.constant 0 : index
    %69 = vector.load %arg1[%c0_74, %c0_75, %c0_76] : memref<8x16x4xf32, #tpu.memory_space<vmem>>, vector<8x16x4xf32>
    %c0_77 = arith.constant 0 : index
    %c0_78 = arith.constant 0 : index
    %70 = vector.load %arg6[%c0_77, %c0_78] : memref<4x8xf32, #tpu.memory_space<vmem>>, vector<4x8xf32>
    %71 = vector.shape_cast %69 : vector<8x16x4xf32> to vector<128x4xf32>
    %cst_79 = arith.constant dense<0.000000e+00> : vector<128x8xf32>
    %72 = tpu.matmul %71, %70, %cst_79 {dimension_numbers = #tpu.dot_dimension_numbers<[1], [0], [0], [1], [0, 0, 1, 1], [], []>} : vector<128x4xf32>, vector<4x8xf32>, vector<128x8xf32> -> vector<128x8xf32>
    %73 = vector.shape_cast %72 : vector<128x8xf32> to vector<8x16x8xf32>
    %c0_80 = arith.constant 0 : index
    %c0_81 = arith.constant 0 : index
    %c0_82 = arith.constant 0 : index
    %74 = vector.load %arg7[%c0_80, %c0_81, %c0_82] : memref<1x1x8xf32, #tpu.memory_space<vmem>>, vector<1x1x8xf32>
    %75 = vector.broadcast %74 : vector<1x1x8xf32> to vector<8x16x8xf32>
    %76 = arith.addf %73, %75 : vector<8x16x8xf32>
    %77 = arith.addf %68, %76 : vector<8x16x8xf32>
    %cst_83 = arith.constant 0.000000e+00 : f32
    %78 = vector.broadcast %cst_83 : f32 to vector<8x16x8xf32>
    %79 = arith.maximumf %77, %78 : vector<8x16x8xf32>
    %c0_84 = arith.constant 0 : index
    %c0_85 = arith.constant 0 : index
    %c0_86 = arith.constant 0 : index
    %80 = vector.load %arg10[%c0_84, %c0_85, %c0_86] : memref<8x16x8xf32, #tpu.memory_space<vmem>>, vector<8x16x8xf32>
    tpu.vector_store %arg10[%c0_84, %c0_85, %c0_86], %79 {strides = array<i32>} : memref<8x16x8xf32, #tpu.memory_space<vmem>>, vector<8x16x8xf32>,
    return
  }
  func.func @transform_0(%arg0: i32) -> (i32, i32, i32) {
    %c0_i32 = arith.constant 0 : i32
    %c0_i32_0 = arith.constant 0 : i32
    %c0_i32_1 = arith.constant 0 : i32
    return %arg0, %c0_i32, %c0_i32_0 : i32, i32, i32
  }
  func.func @transform_1(%arg0: i32) -> (i32, i32, i32) {
    %c0_i32 = arith.constant 0 : i32
    %c0_i32_0 = arith.constant 0 : i32
    %c0_i32_1 = arith.constant 0 : i32
    %c0_i32_2 = arith.constant 0 : i32
    return %c0_i32, %c0_i32_0, %c0_i32_1 : i32, i32, i32
  }
  func.func @transform_2(%arg0: i32) -> (i32, i32, i32) {
    %c0_i32 = arith.constant 0 : i32
    %c0_i32_0 = arith.constant 0 : i32
    %c0_i32_1 = arith.constant 0 : i32
    %c0_i32_2 = arith.constant 0 : i32
    return %c0_i32, %c0_i32_0, %c0_i32_1 : i32, i32, i32
  }
  func.func @transform_3(%arg0: i32) -> (i32, i32, i32) {
    %c0_i32 = arith.constant 0 : i32
    %c0_i32_0 = arith.constant 0 : i32
    %c0_i32_1 = arith.constant 0 : i32
    %c0_i32_2 = arith.constant 0 : i32
    return %c0_i32, %c0_i32_0, %c0_i32_1 : i32, i32, i32
  }
  func.func @transform_4(%arg0: i32) -> (i32, i32, i32) {
    %c0_i32 = arith.constant 0 : i32
    %c0_i32_0 = arith.constant 0 : i32
    %c0_i32_1 = arith.constant 0 : i32
    %c0_i32_2 = arith.constant 0 : i32
    return %c0_i32, %c0_i32_0, %c0_i32_1 : i32, i32, i32
  }
  func.func @transform_5(%arg0: i32) -> (i32, i32) {
    %c0_i32 = arith.constant 0 : i32
    %c0_i32_0 = arith.constant 0 : i32
    %c0_i32_1 = arith.constant 0 : i32
    return %c0_i32, %c0_i32_0 : i32, i32
  }
  func.func @transform_6(%arg0: i32) -> (i32, i32, i32) {
    %c0_i32 = arith.constant 0 : i32
    %c0_i32_0 = arith.constant 0 : i32
    %c0_i32_1 = arith.constant 0 : i32
    %c0_i32_2 = arith.constant 0 : i32
    return %c0_i32, %c0_i32_0, %c0_i32_1 : i32, i32, i32
  }
  func.func @transform_7(%arg0: i32) -> (i32, i32) {
    %c0_i32 = arith.constant 0 : i32
    %c0_i32_0 = arith.constant 0 : i32
    %c0_i32_1 = arith.constant 0 : i32
    return %c0_i32, %c0_i32_0 : i32, i32
  }
  func.func @transform_8(%arg0: i32) -> (i32, i32, i32) {
    %c0_i32 = arith.constant 0 : i32
    %c0_i32_0 = arith.constant 0 : i32
    %c0_i32_1 = arith.constant 0 : i32
    %c0_i32_2 = arith.constant 0 : i32
    return %c0_i32, %c0_i32_0, %c0_i32_1 : i32, i32, i32
  }
  func.func @transform_9(%arg0: i32) -> (i32, i32, i32) {
    %c0_i32 = arith.constant 0 : i32
    %c0_i32_0 = arith.constant 0 : i32
    %c0_i32_1 = arith.constant 0 : i32
    return %arg0, %c0_i32, %c0_i32_0 : i32, i32, i32
  }
}

</mosaic_0001>

<bundles_post_ra>
// kernel: tpu_custom_call.1
= control target key start
LH: loop header
LB: loop body
LE: loop exit
PB: predicated region body
PF: predicated region fallthrough
CT: control target
= control target key end

     0   :  { %vm122_vm0 = vcmask 1043456   ;;  %vm48_vm1 = vcmask 31744   ;;  %v2965_v3 = vmov 0.0   ;;  %vm731_vm2 = vcmask 195584   ;;  %s3550_s1 = inlined_call_operand.vmem [shape: f32[3,4,24], index: 1, kind: input, shape index: {}]   ;;  %s3551_s0 = inlined_call_operand.vmem [shape: f32[8,16,4], index: 0, kind: input, shape index: {}]   ;;  %s3552_s2 = inlined_call_operand.vmem [shape: f32[2,4,16], index: 2, kind: input, shape index: {}]   ;;  %s3553_s3 = inlined_call_operand.vmem [shape: f32[2,4,8], index: 3, kind: input, shape index: {}]   ;;  %s3554_s7 = inlined_call_operand.vmem [shape: f32[24,8], index: 7, kind: input, shape index: {}]   ;;  %s3555_s5 = inlined_call_operand.vmem [shape: f32[4,8], index: 5, kind: input, shape index: {}]   ;;  %s3556_s4 = inlined_call_operand.vmem [shape: f32[1,1,24], index: 4, kind: input, shape index: {}]   ;;  %s3557_s8 = inlined_call_operand.vmem [shape: f32[1,1,8], index: 8, kind: input, shape index: {}]   ;;  %s3558_s6 = inlined_call_operand.vmem [shape: f32[1,1,8], index: 6, kind: input, shape index: {}]   ;;  %s3559_s9 = inlined_call_operand.vmem [shape: f32[8,16,8], index: 9, kind: output, shape index: {}]  }
   0x1   :  { %v73_v0 = vld [vmem:[%s3550_s1] sm:$0xf]  ;;  %49 = vst.msk [vmem:[#allocation2] sm:$0xff] %vm48_vm1, %v2965_v3  ;;  %50 = vst.msk [vmem:[#allocation2 + $0x18] sm:$0xff] %vm48_vm1, %v2965_v3  ;;  %v33_v4 = vld [vmem:[%s3551_s0 + $0x8] sm:$0xff]  ;;  %vm1223_vm3 = vcmask 130048  }
   0x2   :  { %v32_v1 = vld [vmem:[%s3551_s0] sm:$0xff]  ;;  %51 = vst.msk [vmem:[#allocation2 + $0x30] sm:$0xff] %vm48_vm1, %v2965_v3  ;;  %52 = vst.msk [vmem:[#allocation2 + $0x48] sm:$0xff] %vm48_vm1, %v2965_v3  ;;  %2608 = vmatprep.subr.msk.mxu0 %vm122_vm0, %v73_v0  ;;  %2850 = vmatprep.subr.msk.mxu1 %vm122_vm0, %v73_v0  ;;  %v41_v5 = vld [vmem:[%s3551_s0 + $0x48] sm:$0xff]  ;;  %vm1715_vm4 = vcmask 64512  }
   0x3   :  { %v40_v2 = vld [vmem:[%s3551_s0 + $0x40] sm:$0xff]  ;;  %53 = vst.msk [vmem:[#allocation2 + $0x60] sm:$0xff] %vm48_vm1, %v2965_v3  ;;  %54 = vst.msk [vmem:[#allocation2 + $0x78] sm:$0xff] %vm48_vm1, %v2965_v3  ;;  %2609 = vmatpush3.msk.msra.mxu0 %vm122_vm0, %v73_v0  ;;  %2851 = vmatpush3.msk.msra.mxu1 %vm122_vm0, %v73_v0  ;;  %v34_v7 = vld [vmem:[%s3551_s0 + $0x10] sm:$0xff] }
   0x4   :  { %55 = vst.msk [vmem:[#allocation2 + $0x90] sm:$0xff] %vm48_vm1, %v2965_v3  ;;  %56 = vst.msk [vmem:[#allocation2 + $0xa8] sm:$0xff] %vm48_vm1, %v2965_v3  ;;  %v764_v6 = vld [vmem:[%s3552_s2] sm:$0xf]  ;;  %v42_v8 = vld [vmem:[%s3551_s0 + $0x50] sm:$0xff]  ;;  %2610 = vmatprep.mubr.msk.f32.mxu0 %vm48_vm1, %v32_v1  ;;  %2622 = vmatprep.mubr.msk.f32.mxu1 %vm48_vm1, %v40_v2 }
   0x5   :  { %57 = vst.msk [vmem:[#allocation2 + $0x8] sm:$0xff] %vm48_vm1, %v32_v1  ;;  %65 = vst.msk [vmem:[#allocation2 + $0x68] sm:$0xff] %vm48_vm1, %v40_v2  ;;  %v3059_v9 = vld [vmem:[%s3551_s0 + $0x18] sm:$0xff]  ;;  %v3073_v11 = vld [vmem:[%s3551_s0 + $0x20] sm:$0xff]  ;;  %2611 = vmatmul.mubr.msk.f32.vlgmr.msra.gmra.mrb[0].mxu0 %vm48_vm1, %v33_v4  ;;  %2623 = vmatmul.mubr.msk.f32.vlgmr.msra.gmra.mrb[0].mxu1 %vm48_vm1, %v41_v5 }
   0x6   :  { %58 = vst.msk [vmem:[#allocation2 + $0x10] sm:$0xff] %vm48_vm1, %v33_v4  ;;  %66 = vst.msk [vmem:[#allocation2 + $0x70] sm:$0xff] %vm48_vm1, %v41_v5  ;;  %v43_v10 = vld [vmem:[%s3551_s0 + $0x58] sm:$0xff]  ;;  %v44_v12 = vld [vmem:[%s3551_s0 + $0x60] sm:$0xff]  ;;  %2686 = vmatprep.subr.msk.mxu1 %vm122_vm0, %v764_v6  ;;  %2613 = vmatprep.mubr.msk.f32.mxu0 %vm48_vm1, %v34_v7 }
   0x7   :  { %59 = vst.msk [vmem:[#allocation2 + $0x20] sm:$0xff] %vm48_vm1, %v34_v7  ;;  %67 = vst.msk [vmem:[#allocation2 + $0x80] sm:$0xff] %vm48_vm1, %v42_v8  ;;  %v3087_v13 = vld [vmem:[%s3551_s0 + $0x28] sm:$0xff]  ;;  %v3095_v15 = vld [vmem:[%s3551_s0 + $0x30] sm:$0xff]  ;;  %2687 = vmatpush3.msk.msra.mxu1 %vm122_vm0, %v764_v6  ;;  %2625 = vmatprep.mubr.msk.f32.mxu1 %vm48_vm1, %v42_v8 }
   0x8   :  { %60 = vst.msk [vmem:[#allocation2 + $0x28] sm:$0xff] %vm48_vm1, %v3059_v9  ;;  %68 = vst.msk [vmem:[#allocation2 + $0x88] sm:$0xff] %vm48_vm1, %v43_v10  ;;  %v45_v14 = vld [vmem:[%s3551_s0 + $0x68] sm:$0xff]  ;;  %v3107_v16 = vld [vmem:[%s3551_s0 + $0x70] sm:$0xff] }
   0x9   :  { %61 = vst.msk [vmem:[#allocation2 + $0x38] sm:$0xff] %vm48_vm1, %v3073_v11  ;;  %69 = vst.msk [vmem:[#allocation2 + $0x98] sm:$0xff] %vm48_vm1, %v44_v12  ;;  %v3112_v17 = vld [vmem:[%s3551_s0 + $0x38] sm:$0xff]  ;;  %v2311_v19 = vld [vmem:[%s3550_s1 + $0x4] sm:$0xf]  ;;  %2614 = vmatmul.mubr.msk.f32.gmra.mrb[2].mxu0 %vm48_vm1, %v3059_v9  ;;  %2626 = vmatmul.mubr.msk.f32.gmra.mrb[2].mxu1 %vm48_vm1, %v43_v10 }
   0xa   :  { %62 = vst.msk [vmem:[#allocation2 + $0x40] sm:$0xff] %vm48_vm1, %v3087_v13  ;;  %70 = vst.msk [vmem:[#allocation2 + $0xa0] sm:$0xff] %vm48_vm1, %v45_v14  ;;  %v3117_v18 = vld [vmem:[%s3551_s0 + $0x78] sm:$0xff]  ;;  %v2364_v20 = vld [vmem:[%s3552_s2 + $0x4] sm:$0xf]  ;;  %2634 = vmatprep.subr.msk.mxu0 %vm122_vm0, %v2311_v19  ;;  %2616 = vmatprep.mubr.msk.f32.mxu0 %vm48_vm1, %v3073_v11 }
   0xb   :  { %63 = vst.msk [vmem:[#allocation2 + $0x50] sm:$0xff] %vm48_vm1, %v3095_v15  ;;  %71 = vst.msk [vmem:[#allocation2 + $0xb0] sm:$0xff] %vm48_vm1, %v3107_v16  ;;  %2712 = vmatprep.subr.msk.mxu1 %vm122_vm0, %v2364_v20  ;;  %v2329_v21 = vld [vmem:[%s3550_s1 + $0x8] sm:$0xf]  ;;  %2628 = vmatprep.mubr.msk.f32.mxu1 %vm48_vm1, %v44_v12  ;;  %v3164_v28 = vld [vmem:[%s3553_s3] sm:$0xf] }
   0xc   :  { %64 = vst.msk [vmem:[#allocation2 + $0x58] sm:$0xff] %vm48_vm1, %v3112_v17  ;;  %72 = vst.msk [vmem:[#allocation2 + $0xb8] sm:$0xff] %vm48_vm1, %v3117_v18  ;;  %2635 = vmatpush3.msk.msra.mxu0 %vm122_vm0, %v2311_v19  ;;  %v271_v22 = vld [vmem:[#allocation2 + $0x7] sm:$0xff] }
   0xd   :  { %2660 = vmatprep.subr.msk.mxu0 %vm122_vm0, %v2329_v21  ;;  %2617 = vmatmul.mubr.msk.f32.gmra.mrb[4].mxu0 %vm48_vm1, %v3087_v13  ;;  %v748_v23 = vld [vmem:[#allocation2 + $0x5] sm:$0xff]  ;;  %v272_v24 = vld [vmem:[#allocation2 + $0xf] sm:$0xff] }
   0xe   :  { %2629 = vmatmul.mubr.msk.f32.gmra.mrb[4].mxu1 %vm48_vm1, %v45_v14  ;;  %2619 = vmatprep.mubr.msk.f32.mxu0 %vm48_vm1, %v3095_v15  ;;  %v749_v25 = vld [vmem:[#allocation2 + $0xd] sm:$0xff]  ;;  %v273_v26 = vld [vmem:[#allocation2 + $0x1f] sm:$0xff] }
   0xf   :  { %2631 = vmatprep.mubr.msk.f32.mxu1 %vm48_vm1, %v3107_v16  ;;  %v750_v27 = vld [vmem:[#allocation2 + $0x1d] sm:$0xff]  ;;  %v274_v29 = vld [vmem:[#allocation2 + $0x27] sm:$0xff]  ;;  %v280_v41 = vld [vmem:[#allocation2 + $0x6f] sm:$0xff] }
  0x10   :  { %v751_v30 = vld [vmem:[#allocation2 + $0x25] sm:$0xff]  ;;  %v275_v31 = vld [vmem:[#allocation2 + $0x37] sm:$0xff]  ;;  %v757_v42 = vld [vmem:[#allocation2 + $0x6d] sm:$0xff] }
  0x11   :  { %2620 = vmatmul.mubr.msk.f32.gmra.mrb[6].mxu0 %vm48_vm1, %v3112_v17  ;;  %v752_v32 = vld [vmem:[#allocation2 + $0x35] sm:$0xff]  ;;  %v276_v33 = vld [vmem:[#allocation2 + $0x3f] sm:$0xff]  ;;  %v279_v39 = vld [vmem:[#allocation2 + $0x67] sm:$0xff] }
  0x12   :  { %2632 = vmatmul.mubr.msk.f32.gmra.mrb[6].mxu1 %vm48_vm1, %v3117_v18  ;;  %2636 = vmatprep.mubr.msk.f32.mxu0 %vm48_vm1, %v271_v22  ;;  %v753_v34 = vld [vmem:[#allocation2 + $0x3d] sm:$0xff]  ;;  %v277_v35 = vld [vmem:[#allocation2 + $0x4f] sm:$0xff]  ;;  %v756_v40 = vld [vmem:[#allocation2 + $0x65] sm:$0xff] }
  0x13   :  { %2688 = vmatprep.mubr.msk.f32.mxu1 %vm48_vm1, %v748_v23  ;;  %v754_v36 = vld [vmem:[#allocation2 + $0x4d] sm:$0xff]  ;;  %v278_v37 = vld [vmem:[#allocation2 + $0x57] sm:$0xff]  ;;  %v281_v43 = vld [vmem:[#allocation2 + $0x7f] sm:$0xff] }
  0x14   :  { %v755_v38 = vld [vmem:[#allocation2 + $0x55] sm:$0xff]  ;;  %v758_v44 = vld [vmem:[#allocation2 + $0x7d] sm:$0xff]  ;;  %v282_v45 = vld [vmem:[#allocation2 + $0x87] sm:$0xff] }
  0x15   :  { %2637 = vmatmul.mubr.msk.f32.vlgmr.msra.gmra.mrb[0].mxu0 %vm48_vm1, %v272_v24  ;;  %v759_v46 = vld [vmem:[#allocation2 + $0x85] sm:$0xff]  ;;  %v283_v47 = vld [vmem:[#allocation2 + $0x97] sm:$0xff]  ;;  %v285_v51 = vld [vmem:[#allocation2 + $0xaf] sm:$0xff] }
  0x16   :  { %2689 = vmatmul.mubr.msk.f32.vlgmr.msra.gmra.mrb[8].mxu1 %vm48_vm1, %v749_v25  ;;  %2639 = vmatprep.mubr.msk.f32.mxu0 %vm48_vm1, %v273_v26  ;;  %v760_v48 = vld [vmem:[#allocation2 + $0x95] sm:$0xff]  ;;  %v284_v49 = vld [vmem:[#allocation2 + $0x9f] sm:$0xff]  ;;  %v762_v52 = vld [vmem:[#allocation2 + $0xad] sm:$0xff] }
  0x17   :  { %2713 = vmatpush3.msk.msra.mxu1 %vm122_vm0, %v2364_v20  ;;  %2691 = vmatprep.mubr.msk.f32.mxu1 %vm48_vm1, %v750_v27  ;;  %v761_v50 = vld [vmem:[#allocation2 + $0x9d] sm:$0xff]  ;;  %v763_v54 = vld [vmem:[#allocation2 + $0xb5] sm:$0xff]  ;;  %v501_v55 = vld [vmem:[#allocation2 + $0x6] sm:$0xff] }
  0x18   :  { %2661 = vmatpush3.msk.msra.mxu0 %vm122_vm0, %v2329_v21  ;;  %2738 = vmatprep.subr.msk.mxu1 %vm122_vm0, %v3164_v28  ;;  %v286_v53 = vld [vmem:[#allocation2 + $0xb7] sm:$0xff]  ;;  %v961_v56 = vld [vmem:[#allocation2 + $0x4] sm:$0xff]  ;;  %v502_v57 = vld [vmem:[#allocation2 + $0xe] sm:$0xff] }
  0x19   :  { %2640 = vmatmul.mubr.msk.f32.gmra.mrb[2].mxu0 %vm48_vm1, %v274_v29  ;;  %v962_v58 = vld [vmem:[#allocation2 + $0xc] sm:$0xff]  ;;  %v503_v59 = vld [vmem:[#allocation2 + $0x1e] sm:$0xff]  ;;  %v505_v0 = vld [vmem:[#allocation2 + $0x36] sm:$0xff] }
  0x1a   :  { %2692 = vmatmul.mubr.msk.f32.gmra.mrb[10].mxu1 %vm48_vm1, %v751_v30  ;;  %2642 = vmatprep.mubr.msk.f32.mxu0 %vm48_vm1, %v275_v31  ;;  %v963_v60 = vld [vmem:[#allocation2 + $0x1c] sm:$0xff]  ;;  %v3203_v61 = vld [vmem:[%s3553_s3 + $0x4] sm:$0xf]  ;;  %v965_v1 = vld [vmem:[#allocation2 + $0x34] sm:$0xff] }
  0x1b   :  { %2694 = vmatprep.mubr.msk.f32.mxu1 %vm48_vm1, %v752_v32  ;;  %v504_v62 = vld [vmem:[#allocation2 + $0x26] sm:$0xff]  ;;  %v506_v2 = vld [vmem:[#allocation2 + $0x3e] sm:$0xff]  ;;  %v507_v4 = vld [vmem:[#allocation2 + $0x4e] sm:$0xff] }
  0x1c   :  { %v964_v63 = vld [vmem:[#allocation2 + $0x24] sm:$0xff]  ;;  %v966_v3 = vld [vmem:[#allocation2 + $0x3c] sm:$0xff]  ;;  %v967_v5 = vld [vmem:[#allocation2 + $0x4c] sm:$0xff] }
  0x1d   :  { %2643 = vmatmul.mubr.msk.f32.gmra.mrb[4].mxu0 %vm48_vm1, %v276_v33  ;;  %v508_v6 = vld [vmem:[#allocation2 + $0x56] sm:$0xff]  ;;  %v509_v8 = vld [vmem:[#allocation2 + $0x66] sm:$0xff]  ;;  %v510_v12 = vld [vmem:[#allocation2 + $0x6e] sm:$0xff] }
  0x1e   :  { %2695 = vmatmul.mubr.msk.f32.gmra.mrb[12].mxu1 %vm48_vm1, %v753_v34  ;;  %2645 = vmatprep.mubr.msk.f32.mxu0 %vm48_vm1, %v277_v35  ;;  %v968_v7 = vld [vmem:[#allocation2 + $0x54] sm:$0xff]  ;;  %v969_v10 = vld [vmem:[#allocation2 + $0x64] sm:$0xff]  ;;  %v970_v14 = vld [vmem:[#allocation2 + $0x6c] sm:$0xff] }
  0x1f   :  { %2697 = vmatprep.mubr.msk.f32.mxu1 %vm48_vm1, %v754_v36  ;;  %v511_v19 = vld [vmem:[#allocation2 + $0x7e] sm:$0xff]  ;;  %v512_v21 = vld [vmem:[#allocation2 + $0x86] sm:$0xff]  ;;  %v513_v23 = vld [vmem:[#allocation2 + $0x96] sm:$0xff] }
  0x20   :  { %v971_v20 = vld [vmem:[#allocation2 + $0x7c] sm:$0xff]  ;;  %v972_v22 = vld [vmem:[#allocation2 + $0x84] sm:$0xff]  ;;  %v973_v24 = vld [vmem:[#allocation2 + $0x94] sm:$0xff] }
  0x21   :  { %2646 = vmatmul.mubr.msk.f32.gmra.mrb[6].mxu0 %vm48_vm1, %v278_v37  ;;  %v514_v25 = vld [vmem:[#allocation2 + $0x9e] sm:$0xff]  ;;  %v515_v27 = vld [vmem:[#allocation2 + $0xae] sm:$0xff]  ;;  %v516_v29 = vld [vmem:[#allocation2 + $0xb6] sm:$0xff] }
  0x22   :  { %2698 = vmatmul.mubr.msk.f32.gmra.mrb[14].mxu1 %vm48_vm1, %v755_v38  ;;  %2648 = vmatprep.mubr.msk.f32.mxu0 %vm48_vm1, %v279_v39  ;;  %v974_v26 = vld [vmem:[#allocation2 + $0x9c] sm:$0xff]  ;;  %v976_v30 = vld [vmem:[#allocation2 + $0xb4] sm:$0xff]  ;;  %v1241_v32 = vld [vmem:[#allocation2 + $0xb] sm:$0xff] }
  0x23   :  { %2700 = vmatprep.mubr.msk.f32.mxu1 %vm48_vm1, %v756_v40  ;;  %v1240_v31 = vld [vmem:[#allocation2 + $0x3] sm:$0xff]  ;;  %v1242_v33 = vld [vmem:[#allocation2 + $0x1b] sm:$0xff]  ;;  %v1244_v35 = vld [vmem:[#allocation2 + $0x33] sm:$0xff] }
  0x24   :  { %v1243_v34 = vld [vmem:[#allocation2 + $0x23] sm:$0xff]  ;;  %v1245_v36 = vld [vmem:[#allocation2 + $0x3b] sm:$0xff]  ;;  %v1246_v37 = vld [vmem:[#allocation2 + $0x4b] sm:$0xff] }
  0x25   :  { %2649 = vmatmul.mubr.msk.f32.gmra.mrb[8].mxu0 %vm48_vm1, %v280_v41  ;;  %v1247_v38 = vld [vmem:[#allocation2 + $0x53] sm:$0xff]  ;;  %v1248_v39 = vld [vmem:[#allocation2 + $0x63] sm:$0xff]  ;;  %v1249_v40 = vld [vmem:[#allocation2 + $0x6b] sm:$0xff] }
  0x26   :  { %2701 = vmatmul.mubr.msk.f32.gmra.mrb[16].mxu1 %vm48_vm1, %v757_v42  ;;  %2651 = vmatprep.mubr.msk.f32.mxu0 %vm48_vm1, %v281_v43  ;;  %v1250_v41 = vld [vmem:[#allocation2 + $0x7b] sm:$0xff]  ;;  %v1251_v42 = vld [vmem:[#allocation2 + $0x83] sm:$0xff]  ;;  %v1252_v43 = vld [vmem:[#allocation2 + $0x93] sm:$0xff] }
  0x27   :  { %2703 = vmatprep.mubr.msk.f32.mxu1 %vm48_vm1, %v758_v44  ;;  %v1253_v44 = vld [vmem:[#allocation2 + $0x9b] sm:$0xff] }
  0x29   :  { %2652 = vmatmul.mubr.msk.f32.gmra.mrb[10].mxu0 %vm48_vm1, %v282_v45  ;;  %v1254_v45 = vld [vmem:[#allocation2 + $0xab] sm:$0xff] }
  0x2a   :  { %2704 = vmatmul.mubr.msk.f32.gmra.mrb[18].mxu1 %vm48_vm1, %v759_v46  ;;  %2654 = vmatprep.mubr.msk.f32.mxu0 %vm48_vm1, %v283_v47  ;;  %v1255_v46 = vld [vmem:[#allocation2 + $0xb3] sm:$0xff]  ;;  %v1453_v47 = vld [vmem:[#allocation2 + $0x2] sm:$0xff] }
  0x2b   :  { %2706 = vmatprep.mubr.msk.f32.mxu1 %vm48_vm1, %v760_v48  ;;  %v1454_v48 = vld [vmem:[#allocation2 + $0xa] sm:$0xff] }
  0x2d   :  { %2655 = vmatmul.mubr.msk.f32.gmra.mrb[12].mxu0 %vm48_vm1, %v284_v49  ;;  %v1455_v49 = vld [vmem:[#allocation2 + $0x1a] sm:$0xff] }
  0x2e   :  { %2707 = vmatmul.mubr.msk.f32.gmra.mrb[20].mxu1 %vm48_vm1, %v761_v50  ;;  %2657 = vmatprep.mubr.msk.f32.mxu0 %vm48_vm1, %v285_v51  ;;  %v1456_v50 = vld [vmem:[#allocation2 + $0x22] sm:$0xff]  ;;  %v1457_v51 = vld [vmem:[#allocation2 + $0x32] sm:$0xff] }
  0x2f   :  { %2709 = vmatprep.mubr.msk.f32.mxu1 %vm48_vm1, %v762_v52  ;;  %v1458_v52 = vld [vmem:[#allocation2 + $0x3a] sm:$0xff] }
  0x31   :  { %2658 = vmatmul.mubr.msk.f32.gmra.mrb[14].mxu0 %vm48_vm1, %v286_v53  ;;  %v1459_v53 = vld [vmem:[#allocation2 + $0x4a] sm:$0xff] }
  0x32   :  { %2710 = vmatmul.mubr.msk.f32.gmra.mrb[22].mxu1 %vm48_vm1, %v763_v54  ;;  %2662 = vmatprep.mubr.msk.f32.mxu0 %vm48_vm1, %v501_v55  ;;  %v1460_v54 = vld [vmem:[#allocation2 + $0x52] sm:$0xff]  ;;  %v1461_v55 = vld [vmem:[#allocation2 + $0x62] sm:$0xff] }
  0x33   :  { %2714 = vmatprep.mubr.msk.f32.mxu1 %vm48_vm1, %v961_v56  ;;  %v1462_v56 = vld [vmem:[#allocation2 + $0x6a] sm:$0xff] }
  0x35   :  { %2663 = vmatmul.mubr.msk.f32.vlgmr.msra.gmra.mrb[0].mxu0 %vm48_vm1, %v502_v57  ;;  %v1463_v57 = vld [vmem:[#allocation2 + $0x7a] sm:$0xff] }
  0x36   :  { %2715 = vmatmul.mubr.msk.f32.vlgmr.msra.gmra.mrb[8].mxu1 %vm48_vm1, %v962_v58  ;;  %2665 = vmatprep.mubr.msk.f32.mxu0 %vm48_vm1, %v503_v59  ;;  %v1464_v58 = vld [vmem:[#allocation2 + $0x82] sm:$0xff]  ;;  %v1465_v59 = vld [vmem:[#allocation2 + $0x92] sm:$0xff] }
  0x37   :  { %2739 = vmatpush3.msk.msra.mxu1 %vm122_vm0, %v3164_v28  ;;  %2717 = vmatprep.mubr.msk.f32.mxu1 %vm48_vm1, %v963_v60  ;;  %v975_v28 = vld [vmem:[#allocation2 + $0xac] sm:$0xff]  ;;  %v1466_v60 = vld [vmem:[#allocation2 + $0x9a] sm:$0xff] }
  0x38   :  { %2764 = vmatprep.subr.msk.mxu1 %vm122_vm0, %v3203_v61 }
  0x39   :  { %2666 = vmatmul.mubr.msk.f32.gmra.mrb[2].mxu0 %vm48_vm1, %v504_v62  ;;  %v1468_v62 = vld [vmem:[#allocation2 + $0xb2] sm:$0xff] }
  0x3a   :  { %2718 = vmatmul.mubr.msk.f32.gmra.mrb[10].mxu1 %vm48_vm1, %v964_v63  ;;  %2668 = vmatprep.mubr.msk.f32.mxu0 %vm48_vm1, %v505_v0  ;;  %v1787_v63 = vld [vmem:[%s3554_s7] sm:$0xff]  ;;  %v1788_v0 = vld [vmem:[%s3554_s7 + $0x8] sm:$0xff] }
  0x3b   :  { %2720 = vmatprep.mubr.msk.f32.mxu1 %vm48_vm1, %v965_v1  ;;  %v2846_v1 = vpack.c.bf16 %v1788_v0, %v1787_v63 }
  0x3d   :  { %2669 = vmatmul.mubr.msk.f32.gmra.mrb[4].mxu0 %vm48_vm1, %v506_v2  ;;  %2847 = vmatprep.subr.bf16.mxu0 %v2846_v1  ;;  %v1789_v2 = vld [vmem:[%s3554_s7 + $0x10] sm:$0xff] }
  0x3e   :  { %2721 = vmatmul.mubr.msk.f32.gmra.mrb[12].mxu1 %vm48_vm1, %v966_v3  ;;  %2671 = vmatprep.mubr.msk.f32.mxu0 %vm48_vm1, %v507_v4 }
  0x3f   :  { %2723 = vmatprep.mubr.msk.f32.mxu1 %vm48_vm1, %v967_v5  ;;  %2849 = vmatpush3.bf16.msra.mxu0 %v2846_v1 }
  0x40   :  { %2794 = vmatprep.subr.mxu0 %v1789_v2 }
  0x41   :  { %2672 = vmatmul.mubr.msk.f32.gmra.mrb[6].mxu0 %vm48_vm1, %v508_v6 }
  0x42   :  { %2724 = vmatmul.mubr.msk.f32.gmra.mrb[14].mxu1 %vm48_vm1, %v968_v7  ;;  %2674 = vmatprep.mubr.msk.f32.mxu0 %vm48_vm1, %v509_v8  ;;  %v3289_v7 = vld [vmem:[%s3555_s5] sm:$0xf] }
  0x43   :  { %2726 = vmatprep.mubr.msk.f32.mxu1 %vm48_vm1, %v969_v10  ;;  %2795 = vmatpush3.msra.mxu0 %v1789_v2 }
  0x44   :  { %2820 = vmatprep.subr.msk.mxu0 %vm122_vm0, %v3289_v7 }
  0x45   :  { %2675 = vmatmul.mubr.msk.f32.gmra.mrb[8].mxu0 %vm48_vm1, %v510_v12 }
  0x46   :  { %2727 = vmatmul.mubr.msk.f32.gmra.mrb[16].mxu1 %vm48_vm1, %v970_v14  ;;  %2677 = vmatprep.mubr.msk.f32.mxu0 %vm48_vm1, %v511_v19 }
  0x47   :  { %2729 = vmatprep.mubr.msk.f32.mxu1 %vm48_vm1, %v971_v20 }
  0x49   :  { %2678 = vmatmul.mubr.msk.f32.gmra.mrb[10].mxu0 %vm48_vm1, %v512_v21 }
  0x4a   :  { %2730 = vmatmul.mubr.msk.f32.gmra.mrb[18].mxu1 %vm48_vm1, %v972_v22  ;;  %2680 = vmatprep.mubr.msk.f32.mxu0 %vm48_vm1, %v513_v23 }
  0x4b   :  { %2732 = vmatprep.mubr.msk.f32.mxu1 %vm48_vm1, %v973_v24 }
  0x4d   :  { %2681 = vmatmul.mubr.msk.f32.gmra.mrb[12].mxu0 %vm48_vm1, %v514_v25 }
  0x4e   :  { %2733 = vmatmul.mubr.msk.f32.gmra.mrb[20].mxu1 %vm48_vm1, %v974_v26  ;;  %2683 = vmatprep.mubr.msk.f32.mxu0 %vm48_vm1, %v515_v27 }
  0x4f   :  { %2735 = vmatprep.mubr.msk.f32.mxu1 %vm48_vm1, %v975_v28 }
  0x51   :  { %2684 = vmatmul.mubr.msk.f32.gmra.mrb[14].mxu0 %vm48_vm1, %v516_v29 }
  0x52   :  { %2736 = vmatmul.mubr.msk.f32.gmra.mrb[22].mxu1 %vm48_vm1, %v976_v30 }
  0x53   :  { %2740 = vmatprep.mubr.msk.f32.mxu1 %vm48_vm1, %v1240_v31 }
  0x56   :  { %2741 = vmatmul.mubr.msk.f32.vlgmr.msra.gmra.mrb[24].mxu1 %vm48_vm1, %v1241_v32 }
  0x57   :  { %2765 = vmatpush3.msk.msra.mxu1 %vm122_vm0, %v3203_v61  ;;  %2743 = vmatprep.mubr.msk.f32.mxu1 %vm48_vm1, %v1242_v33  ;;  %v1467_v61 = vld [vmem:[#allocation2 + $0xaa] sm:$0xff] }
  0x5a   :  { %2744 = vmatmul.mubr.msk.f32.gmra.mrb[26].mxu1 %vm48_vm1, %v1243_v34 }
  0x5b   :  { %2746 = vmatprep.mubr.msk.f32.mxu1 %vm48_vm1, %v1244_v35 }
  0x5e   :  { %2747 = vmatmul.mubr.msk.f32.gmra.mrb[28].mxu1 %vm48_vm1, %v1245_v36 }
  0x5f   :  { %2749 = vmatprep.mubr.msk.f32.mxu1 %vm48_vm1, %v1246_v37 }
  0x62   :  { %2750 = vmatmul.mubr.msk.f32.gmra.mrb[30].mxu1 %vm48_vm1, %v1247_v38 }
  0x63   :  { %2752 = vmatprep.mubr.msk.f32.mxu1 %vm48_vm1, %v1248_v39 }
  0x66   :  { %2753 = vmatmul.mubr.msk.f32.gmra.mrb[32].mxu1 %vm48_vm1, %v1249_v40 }
  0x67   :  { %2755 = vmatprep.mubr.msk.f32.mxu1 %vm48_vm1, %v1250_v41 }
  0x6a   :  { %2756 = vmatmul.mubr.msk.f32.gmra.mrb[34].mxu1 %vm48_vm1, %v1251_v42 }
  0x6b   :  { %2758 = vmatprep.mubr.msk.f32.mxu1 %vm48_vm1, %v1252_v43 }
  0x6e   :  { %2759 = vmatmul.mubr.msk.f32.gmra.mrb[36].mxu1 %vm48_vm1, %v1253_v44 }
  0x6f   :  { %2761 = vmatprep.mubr.msk.f32.mxu1 %vm48_vm1, %v1254_v45 }
  0x72   :  { %2762 = vmatmul.mubr.msk.f32.gmra.mrb[38].mxu1 %vm48_vm1, %v1255_v46 }
  0x73   :  { %2766 = vmatprep.mubr.msk.f32.mxu1 %vm48_vm1, %v1453_v47 }
  0x76   :  { %2767 = vmatmul.mubr.msk.f32.vlgmr.msra.gmra.mrb[24].mxu1 %vm48_vm1, %v1454_v48 }
  0x77   :  { %2769 = vmatprep.mubr.msk.f32.mxu1 %vm48_vm1, %v1455_v49 }
  0x7a   :  { %2770 = vmatmul.mubr.msk.f32.gmra.mrb[26].mxu1 %vm48_vm1, %v1456_v50 }
  0x7b   :  { %2772 = vmatprep.mubr.msk.f32.mxu1 %vm48_vm1, %v1457_v51 }
  0x7e   :  { %2773 = vmatmul.mubr.msk.f32.gmra.mrb[28].mxu1 %vm48_vm1, %v1458_v52 }
  0x7f   :  { %2775 = vmatprep.mubr.msk.f32.mxu1 %vm48_vm1, %v1459_v53 }
  0x82   :  { %2776 = vmatmul.mubr.msk.f32.gmra.mrb[30].mxu1 %vm48_vm1, %v1460_v54 }
  0x83   :  { %2778 = vmatprep.mubr.msk.f32.mxu1 %vm48_vm1, %v1461_v55 }
  0x86   :  { %2779 = vmatmul.mubr.msk.f32.gmra.mrb[32].mxu1 %vm48_vm1, %v1462_v56 }
  0x87   :  { %2781 = vmatprep.mubr.msk.f32.mxu1 %vm48_vm1, %v1463_v57 }
  0x8a   :  { %2782 = vmatmul.mubr.msk.f32.gmra.mrb[34].mxu1 %vm48_vm1, %v1464_v58 }
  0x8b   :  { %2784 = vmatprep.mubr.msk.f32.mxu1 %vm48_vm1, %v1465_v59 }
  0x8e   :  { %2785 = vmatmul.mubr.msk.f32.gmra.mrb[36].mxu1 %vm48_vm1, %v1466_v60 }
  0x8f   :  { %2787 = vmatprep.mubr.msk.f32.mxu1 %vm48_vm1, %v1467_v61 }
  0x92   :  { %2788 = vmatmul.mubr.msk.f32.gmra.mrb[38].mxu1 %vm48_vm1, %v1468_v62 }
  0xd8   :  { %v2624_v3 = vpop.f32.mrb[0].mxu1 }
  0xd9   :  { %v232_v4 = vpop.f32.mrb[1].mxu1 }
  0xdc   :  { %v3282_v5 = vpop.f32.mrb[2].mxu1 }
  0xdd   :  { %v3284_v6 = vpop.f32.mrb[3].mxu1 }
  0xe1   :  { %v3293_v8 = vpop.f32.mrb[4].mxu1 }
  0xe2   :  { %v3295_v10 = vpop.f32.mrb[5].mxu1 }
  0xe5   :  { %v3297_v12 = vpop.f32.mrb[6].mxu1 }
  0xe6   :  { %v3299_v14 = vpop.f32.mrb[7].mxu1 }
 0x108   :  { %v2664_v19 = vpop.f32.mrb[0].mxu0 }
 0x109   :  { %v2716_v20 = vpop.f32.mrb[8].mxu1  ;;  %733 = vst.msk [vmem:[#allocation3 + $0x8] sm:$0xff] %vm731_vm2, %v2664_v19  ;;  %v636_v21 = vpop.f32.mrb[1].mxu0 }
 0x10a   :  { %v1096_v22 = vpop.f32.mrb[9].mxu1  ;;  %732 = vst.msk [vmem:[#allocation3] sm:$0xff] %vm731_vm2, %v636_v21 }
 0x10c   :  { %v2667_v23 = vpop.f32.mrb[2].mxu0 }
 0x10d   :  { %v2719_v24 = vpop.f32.mrb[10].mxu1  ;;  %735 = vst.msk [vmem:[#allocation3 + $0x18] sm:$0xff] %vm731_vm2, %v2667_v23  ;;  %v646_v25 = vpop.f32.mrb[3].mxu0 }
 0x10e   :  { %v1106_v26 = vpop.f32.mrb[11].mxu1  ;;  %734 = vst.msk [vmem:[#allocation3 + $0x10] sm:$0xff] %vm731_vm2, %v646_v25 }
 0x110   :  { %v1192_v27 = vld [vmem:[#allocation3 + $0x8] sm:$0xff]  ;;  %v2670_v28 = vpop.f32.mrb[4].mxu0 }
 0x111   :  { %v2722_v29 = vpop.f32.mrb[12].mxu1  ;;  %v1208_v30 = vadd.f32 %v2716_v20, %v1192_v27  ;;  %v1191_v31 = vld [vmem:[#allocation3] sm:$0xff]  ;;  %737 = vst.msk [vmem:[#allocation3 + $0x28] sm:$0xff] %vm731_vm2, %v2670_v28  ;;  %v656_v32 = vpop.f32.mrb[5].mxu0 }
 0x112   :  { %v1116_v33 = vpop.f32.mrb[13].mxu1  ;;  %v1207_v34 = vadd.f32 %v1191_v31, %v1096_v22  ;;  %736 = vst.msk [vmem:[#allocation3 + $0x20] sm:$0xff] %vm731_vm2, %v656_v32 }
 0x113   :  { %1225 = vst.msk [vmem:[#allocation3 + $0x8] sm:$0xff] %vm1223_vm3, %v1208_v30 }
 0x114   :  { %1224 = vst.msk [vmem:[#allocation3] sm:$0xff] %vm1223_vm3, %v1207_v34  ;;  %v1194_v35 = vld [vmem:[#allocation3 + $0x18] sm:$0xff]  ;;  %v2673_v36 = vpop.f32.mrb[6].mxu0 }
 0x115   :  { %v2725_v37 = vpop.f32.mrb[14].mxu1  ;;  %v1210_v38 = vadd.f32 %v2719_v24, %v1194_v35  ;;  %v1193_v39 = vld [vmem:[#allocation3 + $0x10] sm:$0xff]  ;;  %739 = vst.msk [vmem:[#allocation3 + $0x38] sm:$0xff] %vm731_vm2, %v2673_v36  ;;  %v666_v40 = vpop.f32.mrb[7].mxu0 }
 0x116   :  { %v1126_v41 = vpop.f32.mrb[15].mxu1  ;;  %v1209_v42 = vadd.f32 %v1193_v39, %v1106_v26  ;;  %738 = vst.msk [vmem:[#allocation3 + $0x30] sm:$0xff] %vm731_vm2, %v666_v40 }
 0x117   :  { %1227 = vst.msk [vmem:[#allocation3 + $0x18] sm:$0xff] %vm1223_vm3, %v1210_v38 }
 0x118   :  { %1226 = vst.msk [vmem:[#allocation3 + $0x10] sm:$0xff] %vm1223_vm3, %v1209_v42  ;;  %v1196_v43 = vld [vmem:[#allocation3 + $0x28] sm:$0xff]  ;;  %v2676_v44 = vpop.f32.mrb[8].mxu0 }
 0x119   :  { %v2728_v45 = vpop.f32.mrb[16].mxu1  ;;  %v1212_v46 = vadd.f32 %v2722_v29, %v1196_v43  ;;  %v1195_v47 = vld [vmem:[#allocation3 + $0x20] sm:$0xff]  ;;  %v2852_v48 = vadd.f32 %v2676_v44, %v2624_v3  ;;  %v676_v49 = vpop.f32.mrb[9].mxu0 }
 0x11a   :  { %v1136_v50 = vpop.f32.mrb[17].mxu1  ;;  %v1211_v51 = vadd.f32 %v1195_v47, %v1116_v33  ;;  %v2853_v52 = vadd.f32 %v676_v49, %v232_v4  ;;  %v1684_v36 = vld [vmem:[#allocation3 + $0x8] sm:$0xff]  ;;  %v3346_v49 = vld [vmem:[%s3556_s4] ss:$0 sm:$0xff] }
 0x11b   :  { %1229 = vst.msk [vmem:[#allocation3 + $0x28] sm:$0xff] %vm1223_vm3, %v1212_v46  ;;  %v1683_v39 = vld [vmem:[#allocation3] sm:$0xff] }
 0x11c   :  { %741 = vst.msk [vmem:[#allocation3 + $0x48] sm:$0xff] %vm731_vm2, %v2852_v48  ;;  %v1198_v53 = vld [vmem:[#allocation3 + $0x38] sm:$0xff]  ;;  %740 = vst.msk [vmem:[#allocation3 + $0x40] sm:$0xff] %vm731_vm2, %v2853_v52  ;;  %v2679_v54 = vpop.f32.mrb[10].mxu0 }
 0x11d   :  { %1228 = vst.msk [vmem:[#allocation3 + $0x20] sm:$0xff] %vm1223_vm3, %v1211_v51  ;;  %v2731_v55 = vpop.f32.mrb[18].mxu1  ;;  %v1214_v56 = vadd.f32 %v2725_v37, %v1198_v53  ;;  %v1197_v57 = vld [vmem:[#allocation3 + $0x30] sm:$0xff]  ;;  %v2854_v58 = vadd.f32 %v2679_v54, %v3282_v5  ;;  %v686_v59 = vpop.f32.mrb[11].mxu0 }
 0x11e   :  { %v1146_v60 = vpop.f32.mrb[19].mxu1  ;;  %v1213_v61 = vadd.f32 %v1197_v57, %v1126_v41  ;;  %v2855_v62 = vadd.f32 %v686_v59, %v3284_v6  ;;  %v1686_v42 = vld [vmem:[#allocation3 + $0x18] sm:$0xff] }
 0x11f   :  { %1231 = vst.msk [vmem:[#allocation3 + $0x38] sm:$0xff] %vm1223_vm3, %v1214_v56 }
 0x120   :  { %743 = vst.msk [vmem:[#allocation3 + $0x58] sm:$0xff] %vm731_vm2, %v2854_v58  ;;  %742 = vst.msk [vmem:[#allocation3 + $0x50] sm:$0xff] %vm731_vm2, %v2855_v62  ;;  %v2682_v63 = vpop.f32.mrb[12].mxu0 }
 0x121   :  { %1230 = vst.msk [vmem:[#allocation3 + $0x30] sm:$0xff] %vm1223_vm3, %v1213_v61  ;;  %v2734_v0 = vpop.f32.mrb[20].mxu1  ;;  %v2856_v1 = vadd.f32 %v2682_v63, %v3293_v8  ;;  %v696_v2 = vpop.f32.mrb[13].mxu0 }
 0x122   :  { %v1156_v3 = vpop.f32.mrb[21].mxu1  ;;  %v2857_v5 = vadd.f32 %v696_v2, %v3295_v10  ;;  %v1688_v48 = vld [vmem:[#allocation3 + $0x28] sm:$0xff] }
 0x123   :  { %v1200_v4 = vld [vmem:[#allocation3 + $0x48] sm:$0xff]  ;;  %v1199_v20 = vld [vmem:[#allocation3 + $0x40] sm:$0xff]  ;;  %745 = vst.msk [vmem:[#allocation3 + $0x68] sm:$0xff] %vm731_vm2, %v2856_v1 }
 0x124   :  { %v1216_v19 = vadd.f32 %v2728_v45, %v1200_v4  ;;  %v1215_v6 = vadd.f32 %v1199_v20, %v1136_v50  ;;  %744 = vst.msk [vmem:[#allocation3 + $0x60] sm:$0xff] %vm731_vm2, %v2857_v5  ;;  %v2685_v21 = vpop.f32.mrb[14].mxu0  ;;  %v1685_v45 = vld [vmem:[#allocation3 + $0x10] sm:$0xff]  ;;  %v1687_v52 = vld [vmem:[#allocation3 + $0x20] sm:$0xff] }
 0x125   :  { %v2737_v22 = vpop.f32.mrb[22].mxu1  ;;  %v2858_v23 = vadd.f32 %v2685_v21, %v3297_v12  ;;  %v706_v24 = vpop.f32.mrb[15].mxu0 }
 0x126   :  { %1233 = vst.msk [vmem:[#allocation3 + $0x48] sm:$0xff] %vm1223_vm3, %v1216_v19  ;;  %v1166_v8 = vpop.f32.mrb[23].mxu1  ;;  %1232 = vst.msk [vmem:[#allocation3 + $0x40] sm:$0xff] %vm1223_vm3, %v1215_v6  ;;  %v2859_v10 = vadd.f32 %v706_v24, %v3299_v14  ;;  %v1690_v58 = vld [vmem:[#allocation3 + $0x38] sm:$0xff] }
 0x127   :  { %v1202_v25 = vld [vmem:[#allocation3 + $0x58] sm:$0xff]  ;;  %v1201_v27 = vld [vmem:[#allocation3 + $0x50] sm:$0xff]  ;;  %747 = vst.msk [vmem:[#allocation3 + $0x78] sm:$0xff] %vm731_vm2, %v2858_v23 }
 0x128   :  { %v1218_v26 = vadd.f32 %v2731_v55, %v1202_v25  ;;  %v1217_v28 = vadd.f32 %v1201_v27, %v1146_v60  ;;  %746 = vst.msk [vmem:[#allocation3 + $0x70] sm:$0xff] %vm731_vm2, %v2859_v10  ;;  %v1689_v62 = vld [vmem:[#allocation3 + $0x30] sm:$0xff] }
 0x12a   :  { %1235 = vst.msk [vmem:[#allocation3 + $0x58] sm:$0xff] %vm1223_vm3, %v1218_v26  ;;  %1234 = vst.msk [vmem:[#allocation3 + $0x50] sm:$0xff] %vm1223_vm3, %v1217_v28  ;;  %v1204_v29 = vld [vmem:[#allocation3 + $0x68] sm:$0xff] }
 0x12b   :  { %v1220_v12 = vadd.f32 %v2734_v0, %v1204_v29  ;;  %v1203_v30 = vld [vmem:[#allocation3 + $0x60] sm:$0xff] }
 0x12c   :  { %v1219_v31 = vadd.f32 %v1203_v30, %v1156_v3 }
 0x12d   :  { %1237 = vst.msk [vmem:[#allocation3 + $0x68] sm:$0xff] %vm1223_vm3, %v1220_v12  ;;  %v1692_v19 = vld [vmem:[#allocation3 + $0x48] sm:$0xff] }
 0x12e   :  { %1236 = vst.msk [vmem:[#allocation3 + $0x60] sm:$0xff] %vm1223_vm3, %v1219_v31  ;;  %v1206_v14 = vld [vmem:[#allocation3 + $0x78] sm:$0xff] }
 0x12f   :  { %v1222_v32 = vadd.f32 %v2737_v22, %v1206_v14  ;;  %v1205_v33 = vld [vmem:[#allocation3 + $0x70] sm:$0xff]  ;;  %v1691_v22 = vld [vmem:[#allocation3 + $0x40] sm:$0xff] }
 0x130   :  { %v1221_v34 = vadd.f32 %v1205_v33, %v1166_v8 }
 0x131   :  { %1239 = vst.msk [vmem:[#allocation3 + $0x78] sm:$0xff] %vm1223_vm3, %v1222_v32  ;;  %v1694_v28 = vld [vmem:[#allocation3 + $0x58] sm:$0xff]  ;;  %v1693_v31 = vld [vmem:[#allocation3 + $0x50] sm:$0xff] }
 0x132   :  { %1238 = vst.msk [vmem:[#allocation3 + $0x70] sm:$0xff] %vm1223_vm3, %v1221_v34 }
 0x149   :  { %v2768_v35 = vpop.f32.mrb[24].mxu1 }
 0x14a   :  { %v1700_v37 = vadd.f32 %v2768_v35, %v1684_v36  ;;  %v1588_v38 = vpop.f32.mrb[25].mxu1 }
 0x14b   :  { %v1699_v40 = vadd.f32 %v1683_v39, %v1588_v38 }
 0x14c   :  { %1717 = vst.msk [vmem:[#allocation3 + $0x8] sm:$0xff] %vm1715_vm4, %v1700_v37  ;;  %v1696_v37 = vld [vmem:[#allocation3 + $0x68] sm:$0xff] }
 0x14d   :  { %1716 = vst.msk [vmem:[#allocation3] sm:$0xff] %vm1715_vm4, %v1699_v40  ;;  %v2771_v41 = vpop.f32.mrb[26].mxu1 }
 0x14e   :  { %v1702_v43 = vadd.f32 %v2771_v41, %v1686_v42  ;;  %v1598_v44 = vpop.f32.mrb[27].mxu1  ;;  %v1695_v41 = vld [vmem:[#allocation3 + $0x60] sm:$0xff] }
 0x14f   :  { %v1701_v46 = vadd.f32 %v1685_v45, %v1598_v44 }
 0x150   :  { %1719 = vst.msk [vmem:[#allocation3 + $0x18] sm:$0xff] %vm1715_vm4, %v1702_v43 }
 0x151   :  { %1718 = vst.msk [vmem:[#allocation3 + $0x10] sm:$0xff] %vm1715_vm4, %v1701_v46  ;;  %v2774_v47 = vpop.f32.mrb[28].mxu1 }
 0x152   :  { %v1704_v50 = vadd.f32 %v2774_v47, %v1688_v48  ;;  %v1608_v51 = vpop.f32.mrb[29].mxu1 }
 0x153   :  { %v1703_v53 = vadd.f32 %v1687_v52, %v1608_v51  ;;  %v1733_v54 = vld [vmem:[#allocation3 + $0x8] sm:$0xff] }
 0x154   :  { %1721 = vst.msk [vmem:[#allocation3 + $0x28] sm:$0xff] %vm1715_vm4, %v1704_v50  ;;  %v1732_v55 = vld [vmem:[#allocation3] sm:$0xff]  ;;  %v1756_v56 = vadd.f32 %v3346_v49, %v1733_v54  ;;  %v1698_v50 = vld [vmem:[#allocation3 + $0x78] sm:$0xff]  ;;  %v1697_v54 = vld [vmem:[#allocation3 + $0x70] sm:$0xff] }
 0x155   :  { %1720 = vst.msk [vmem:[#allocation3 + $0x20] sm:$0xff] %vm1715_vm4, %v1703_v53  ;;  %v2777_v57 = vpop.f32.mrb[30].mxu1  ;;  %v1755_v59 = vadd.f32 %v3346_v49, %v1732_v55 }
 0x156   :  { %v1706_v60 = vadd.f32 %v2777_v57, %v1690_v58  ;;  %v1618_v61 = vpop.f32.mrb[31].mxu1  ;;  %v1772_v2 = vmax.f32 %v1756_v56, 0.0 }
 0x157   :  { %v1705_v63 = vadd.f32 %v1689_v62, %v1618_v61  ;;  %v1771_v0 = vmax.f32 %v1755_v59, 0.0  ;;  %v1735_v1 = vld [vmem:[#allocation3 + $0x18] sm:$0xff] }
 0x158   :  { %1723 = vst.msk [vmem:[#allocation3 + $0x38] sm:$0xff] %vm1715_vm4, %v1706_v60  ;;  %v1734_v3 = vld [vmem:[#allocation3 + $0x10] sm:$0xff]  ;;  %v1758_v4 = vadd.f32 %v3346_v49, %v1735_v1 }
 0x159   :  { %1722 = vst.msk [vmem:[#allocation3 + $0x30] sm:$0xff] %vm1715_vm4, %v1705_v63  ;;  %v2780_v5 = vpop.f32.mrb[32].mxu1  ;;  %2796 = vmatprep.mubr.msk.f32.mxu0 %vm731_vm2, %v1771_v0  ;;  %v1757_v20 = vadd.f32 %v3346_v49, %v1734_v3 }
 0x15a   :  { %v1708_v6 = vadd.f32 %v2780_v5, %v1692_v19  ;;  %v1628_v21 = vpop.f32.mrb[33].mxu1  ;;  %2797 = vmatmul.mubr.msk.f32.vlgmr.msra.gmra.mrb[16].mxu0 %vm731_vm2, %v1772_v2  ;;  %v1774_v25 = vmax.f32 %v1758_v4, 0.0 }
 0x15b   :  { %v1707_v23 = vadd.f32 %v1691_v22, %v1628_v21  ;;  %2821 = vmatpush3.msk.msra.mxu0 %vm122_vm0, %v3289_v7  ;;  %v1773_v24 = vmax.f32 %v1757_v20, 0.0  ;;  %v1737_v8 = vld [vmem:[#allocation3 + $0x28] sm:$0xff] }
 0x15c   :  { %1725 = vst.msk [vmem:[#allocation3 + $0x48] sm:$0xff] %vm1715_vm4, %v1708_v6  ;;  %v1736_v10 = vld [vmem:[#allocation3 + $0x20] sm:$0xff]  ;;  %v1760_v26 = vadd.f32 %v3346_v49, %v1737_v8  ;;  %v2007_v8 = vld [vmem:[%s3551_s0 + $0x8] sm:$0xff] }
 0x15d   :  { %1724 = vst.msk [vmem:[#allocation3 + $0x40] sm:$0xff] %vm1715_vm4, %v1707_v23  ;;  %v2783_v27 = vpop.f32.mrb[34].mxu1  ;;  %2799 = vmatprep.mubr.msk.f32.mxu0 %vm731_vm2, %v1773_v24  ;;  %v1759_v29 = vadd.f32 %v3346_v49, %v1736_v10  ;;  %v2006_v24 = vld [vmem:[%s3551_s0] sm:$0xff] }
 0x15e   :  { %v1710_v12 = vadd.f32 %v2783_v27, %v1694_v28  ;;  %v1638_v30 = vpop.f32.mrb[35].mxu1  ;;  %2800 = vmatmul.mubr.msk.f32.gmra.mrb[18].mxu0 %vm731_vm2, %v1774_v25  ;;  %v1776_v33 = vmax.f32 %v1760_v26, 0.0  ;;  %v2014_v25 = vld [vmem:[%s3551_s0 + $0x40] sm:$0xff] }
 0x15f   :  { %v1709_v7 = vadd.f32 %v1693_v31, %v1638_v30  ;;  %v1775_v14 = vmax.f32 %v1759_v29, 0.0  ;;  %v1739_v32 = vld [vmem:[#allocation3 + $0x38] sm:$0xff]  ;;  %v3447_v10 = vld [vmem:[%s3557_s8] ss:$0 sm:$0xff] }
 0x160   :  { %1727 = vst.msk [vmem:[#allocation3 + $0x58] sm:$0xff] %vm1715_vm4, %v1710_v12  ;;  %v1738_v34 = vld [vmem:[#allocation3 + $0x30] sm:$0xff]  ;;  %v1762_v35 = vadd.f32 %v3346_v49, %v1739_v32  ;;  %v3452_v27 = vld [vmem:[%s3558_s6] ss:$0 sm:$0xff] }
 0x161   :  { %1726 = vst.msk [vmem:[#allocation3 + $0x50] sm:$0xff] %vm1715_vm4, %v1709_v7  ;;  %v2786_v36 = vpop.f32.mrb[36].mxu1  ;;  %2802 = vmatprep.mubr.msk.f32.mxu0 %vm731_vm2, %v1775_v14  ;;  %v1761_v38 = vadd.f32 %v3346_v49, %v1738_v34 }
 0x162   :  { %v1712_v39 = vadd.f32 %v2786_v36, %v1696_v37  ;;  %v1648_v40 = vpop.f32.mrb[37].mxu1  ;;  %2803 = vmatmul.mubr.msk.f32.gmra.mrb[20].mxu0 %vm731_vm2, %v1776_v33  ;;  %v1778_v45 = vmax.f32 %v1762_v35, 0.0 }
 0x163   :  { %v1711_v42 = vadd.f32 %v1695_v41, %v1648_v40  ;;  %v1777_v43 = vmax.f32 %v1761_v38, 0.0  ;;  %v1741_v44 = vld [vmem:[#allocation3 + $0x48] sm:$0xff] }
 0x164   :  { %1729 = vst.msk [vmem:[#allocation3 + $0x68] sm:$0xff] %vm1715_vm4, %v1712_v39  ;;  %v1740_v46 = vld [vmem:[#allocation3 + $0x40] sm:$0xff]  ;;  %v1764_v47 = vadd.f32 %v3346_v49, %v1741_v44 }
 0x165   :  { %1728 = vst.msk [vmem:[#allocation3 + $0x60] sm:$0xff] %vm1715_vm4, %v1711_v42  ;;  %v2789_v48 = vpop.f32.mrb[38].mxu1  ;;  %2805 = vmatprep.mubr.msk.f32.mxu0 %vm731_vm2, %v1777_v43  ;;  %v1763_v51 = vadd.f32 %v3346_v49, %v1740_v46 }
 0x166   :  { %v1714_v52 = vadd.f32 %v2789_v48, %v1698_v50  ;;  %v1658_v53 = vpop.f32.mrb[39].mxu1  ;;  %2806 = vmatmul.mubr.msk.f32.gmra.mrb[22].mxu0 %vm731_vm2, %v1778_v45  ;;  %v1780_v58 = vmax.f32 %v1764_v47, 0.0 }
 0x167   :  { %v1713_v55 = vadd.f32 %v1697_v54, %v1658_v53  ;;  %v1779_v56 = vmax.f32 %v1763_v51, 0.0  ;;  %v1743_v57 = vld [vmem:[#allocation3 + $0x58] sm:$0xff] }
 0x168   :  { %1731 = vst.msk [vmem:[#allocation3 + $0x78] sm:$0xff] %vm1715_vm4, %v1714_v52  ;;  %v1742_v59 = vld [vmem:[#allocation3 + $0x50] sm:$0xff]  ;;  %v1766_v60 = vadd.f32 %v3346_v49, %v1743_v57 }
 0x169   :  { %1730 = vst.msk [vmem:[#allocation3 + $0x70] sm:$0xff] %vm1715_vm4, %v1713_v55  ;;  %2808 = vmatprep.mubr.msk.f32.mxu0 %vm731_vm2, %v1779_v56  ;;  %v1765_v61 = vadd.f32 %v3346_v49, %v1742_v59 }
 0x16a   :  { %2809 = vmatmul.mubr.msk.f32.gmra.mrb[24].mxu0 %vm731_vm2, %v1780_v58  ;;  %v1782_v0 = vmax.f32 %v1766_v60, 0.0 }
 0x16b   :  { %v1781_v62 = vmax.f32 %v1765_v61, 0.0  ;;  %v1745_v63 = vld [vmem:[#allocation3 + $0x68] sm:$0xff] }
 0x16c   :  { %v1744_v1 = vld [vmem:[#allocation3 + $0x60] sm:$0xff]  ;;  %v1768_v2 = vadd.f32 %v3346_v49, %v1745_v63 }
 0x16d   :  { %2811 = vmatprep.mubr.msk.f32.mxu0 %vm731_vm2, %v1781_v62  ;;  %v1767_v3 = vadd.f32 %v3346_v49, %v1744_v1 }
 0x16e   :  { %2812 = vmatmul.mubr.msk.f32.gmra.mrb[26].mxu0 %vm731_vm2, %v1782_v0  ;;  %v1784_v19 = vmax.f32 %v1768_v2, 0.0 }
 0x16f   :  { %v1783_v4 = vmax.f32 %v1767_v3, 0.0  ;;  %v1747_v5 = vld [vmem:[#allocation3 + $0x78] sm:$0xff] }
 0x170   :  { %v1746_v20 = vld [vmem:[#allocation3 + $0x70] sm:$0xff]  ;;  %v1770_v6 = vadd.f32 %v3346_v49, %v1747_v5 }
 0x171   :  { %2814 = vmatprep.mubr.msk.f32.mxu0 %vm731_vm2, %v1783_v4  ;;  %v1769_v21 = vadd.f32 %v3346_v49, %v1746_v20  ;;  %v2008_v49 = vld [vmem:[%s3551_s0 + $0x10] sm:$0xff] }
 0x172   :  { %2815 = vmatmul.mubr.msk.f32.gmra.mrb[28].mxu0 %vm731_vm2, %v1784_v19  ;;  %v1786_v23 = vmax.f32 %v1770_v6, 0.0 }
 0x173   :  { %v1785_v22 = vmax.f32 %v1769_v21, 0.0 }
 0x175   :  { %2817 = vmatprep.mubr.msk.f32.mxu0 %vm731_vm2, %v1785_v22 }
 0x176   :  { %2818 = vmatmul.mubr.msk.f32.gmra.mrb[30].mxu0 %vm731_vm2, %v1786_v23 }
 0x177   :  { %2822 = vmatprep.mubr.msk.f32.mxu0 %vm48_vm1, %v2006_v24 }
 0x17a   :  { %2823 = vmatmul.mubr.msk.f32.vlgmr.msra.gmra.mrb[16].mxu0 %vm48_vm1, %v2007_v8 }
 0x17b   :  { %2825 = vmatprep.mubr.msk.f32.mxu0 %vm48_vm1, %v2008_v49 }
 0x17e   :  { %2826 = vmatmul.mubr.msk.f32.gmra.mrb[18].mxu0 %vm48_vm1, %v3059_v9  ;;  %v2015_v9 = vld [vmem:[%s3551_s0 + $0x48] sm:$0xff] }
 0x17f   :  { %2828 = vmatprep.mubr.msk.f32.mxu0 %vm48_vm1, %v3073_v11  ;;  %v2016_v11 = vld [vmem:[%s3551_s0 + $0x50] sm:$0xff] }
 0x182   :  { %2829 = vmatmul.mubr.msk.f32.gmra.mrb[20].mxu0 %vm48_vm1, %v3087_v13  ;;  %v2017_v13 = vld [vmem:[%s3551_s0 + $0x58] sm:$0xff] }
 0x183   :  { %2831 = vmatprep.mubr.msk.f32.mxu0 %vm48_vm1, %v3095_v15  ;;  %v2018_v15 = vld [vmem:[%s3551_s0 + $0x60] sm:$0xff] }
 0x186   :  { %2832 = vmatmul.mubr.msk.f32.gmra.mrb[22].mxu0 %vm48_vm1, %v3112_v17  ;;  %v2019_v17 = vld [vmem:[%s3551_s0 + $0x68] sm:$0xff] }
 0x187   :  { %2834 = vmatprep.mubr.msk.f32.mxu0 %vm48_vm1, %v2014_v25 }
 0x18a   :  { %2835 = vmatmul.mubr.msk.f32.gmra.mrb[24].mxu0 %vm48_vm1, %v2015_v9 }
 0x18b   :  { %2837 = vmatprep.mubr.msk.f32.mxu0 %vm48_vm1, %v2016_v11 }
 0x18e   :  { %2838 = vmatmul.mubr.msk.f32.gmra.mrb[26].mxu0 %vm48_vm1, %v2017_v13 }
 0x18f   :  { %2840 = vmatprep.mubr.msk.f32.mxu0 %vm48_vm1, %v2018_v15 }
 0x192   :  { %2841 = vmatmul.mubr.msk.f32.gmra.mrb[28].mxu0 %vm48_vm1, %v2019_v17 }
 0x193   :  { %2843 = vmatprep.mubr.msk.f32.mxu0 %vm48_vm1, %v3107_v16 }
 0x196   :  { %2844 = vmatmul.mubr.msk.f32.gmra.mrb[30].mxu0 %vm48_vm1, %v3117_v18 }
 0x24d   :  { %v2824_v26 = vpop.f32.mrb[16].mxu0 }
 0x24e   :  { %v2860_v28 = vadd.f32 %v2824_v26, %v3447_v10  ;;  %v2140_v29 = vpop.f32.mrb[17].mxu0 }
 0x24f   :  { %v2862_v12 = vadd.f32 %v3447_v10, %v2140_v29 }
 0x250   :  { %v2861_v16 = vadd.f32 %v2860_v28, %v3452_v27 }
 0x251   :  { %v2863_v18 = vadd.f32 %v2862_v12, %v3452_v27  ;;  %v2827_v30 = vpop.f32.mrb[18].mxu0 }
 0x252   :  { %v2259_v31 = vmax.f32 %v2861_v16, 0.0  ;;  %v2864_v7 = vadd.f32 %v2827_v30, %v3447_v10  ;;  %v2150_v14 = vpop.f32.mrb[19].mxu0 }
 0x253   :  { %v2258_v32 = vmax.f32 %v2863_v18, 0.0  ;;  %v2866_v33 = vadd.f32 %v3447_v10, %v2150_v14 }
 0x254   :  { %2275 = vst.msk [vmem:[%s3559_s9 + $0x8] sm:$0xff] %vm1715_vm4, %v2259_v31  ;;  %v2865_v34 = vadd.f32 %v2864_v7, %v3452_v27 }
 0x255   :  { %2274 = vst.msk [vmem:[%s3559_s9] sm:$0xff] %vm1715_vm4, %v2258_v32  ;;  %v2867_v35 = vadd.f32 %v2866_v33, %v3452_v27  ;;  %v2830_v36 = vpop.f32.mrb[20].mxu0 }
 0x256   :  { %v2261_v37 = vmax.f32 %v2865_v34, 0.0  ;;  %v2868_v38 = vadd.f32 %v2830_v36, %v3447_v10  ;;  %v2160_v39 = vpop.f32.mrb[21].mxu0 }
 0x257   :  { %v2260_v40 = vmax.f32 %v2867_v35, 0.0  ;;  %v2870_v41 = vadd.f32 %v3447_v10, %v2160_v39 }
 0x258   :  { %2277 = vst.msk [vmem:[%s3559_s9 + $0x18] sm:$0xff] %vm1715_vm4, %v2261_v37  ;;  %v2869_v42 = vadd.f32 %v2868_v38, %v3452_v27 }
 0x259   :  { %2276 = vst.msk [vmem:[%s3559_s9 + $0x10] sm:$0xff] %vm1715_vm4, %v2260_v40  ;;  %v2871_v43 = vadd.f32 %v2870_v41, %v3452_v27  ;;  %v2833_v44 = vpop.f32.mrb[22].mxu0 }
 0x25a   :  { %v2263_v45 = vmax.f32 %v2869_v42, 0.0  ;;  %v2872_v46 = vadd.f32 %v2833_v44, %v3447_v10  ;;  %v2170_v47 = vpop.f32.mrb[23].mxu0 }
 0x25b   :  { %v2262_v48 = vmax.f32 %v2871_v43, 0.0  ;;  %v2874_v50 = vadd.f32 %v3447_v10, %v2170_v47 }
 0x25c   :  { %2279 = vst.msk [vmem:[%s3559_s9 + $0x28] sm:$0xff] %vm1715_vm4, %v2263_v45  ;;  %v2873_v51 = vadd.f32 %v2872_v46, %v3452_v27 }
 0x25d   :  { %2278 = vst.msk [vmem:[%s3559_s9 + $0x20] sm:$0xff] %vm1715_vm4, %v2262_v48  ;;  %v2875_v52 = vadd.f32 %v2874_v50, %v3452_v27  ;;  %v2836_v53 = vpop.f32.mrb[24].mxu0 }
 0x25e   :  { %v2265_v54 = vmax.f32 %v2873_v51, 0.0  ;;  %v2876_v55 = vadd.f32 %v2836_v53, %v3447_v10  ;;  %v2180_v56 = vpop.f32.mrb[25].mxu0 }
 0x25f   :  { %v2264_v57 = vmax.f32 %v2875_v52, 0.0  ;;  %v2878_v58 = vadd.f32 %v3447_v10, %v2180_v56 }
 0x260   :  { %2281 = vst.msk [vmem:[%s3559_s9 + $0x38] sm:$0xff] %vm1715_vm4, %v2265_v54  ;;  %v2877_v59 = vadd.f32 %v2876_v55, %v3452_v27 }
 0x261   :  { %2280 = vst.msk [vmem:[%s3559_s9 + $0x30] sm:$0xff] %vm1715_vm4, %v2264_v57  ;;  %v2879_v60 = vadd.f32 %v2878_v58, %v3452_v27  ;;  %v2839_v61 = vpop.f32.mrb[26].mxu0 }
 0x262   :  { %v2267_v62 = vmax.f32 %v2877_v59, 0.0  ;;  %v2880_v63 = vadd.f32 %v2839_v61, %v3447_v10  ;;  %v2190_v0 = vpop.f32.mrb[27].mxu0 }
 0x263   :  { %v2266_v1 = vmax.f32 %v2879_v60, 0.0  ;;  %v2882_v2 = vadd.f32 %v3447_v10, %v2190_v0 }
 0x264   :  { %2283 = vst.msk [vmem:[%s3559_s9 + $0x48] sm:$0xff] %vm1715_vm4, %v2267_v62  ;;  %v2881_v3 = vadd.f32 %v2880_v63, %v3452_v27 }
 0x265   :  { %2282 = vst.msk [vmem:[%s3559_s9 + $0x40] sm:$0xff] %vm1715_vm4, %v2266_v1  ;;  %v2883_v4 = vadd.f32 %v2882_v2, %v3452_v27  ;;  %v2842_v5 = vpop.f32.mrb[28].mxu0 }
 0x266   :  { %v2269_v19 = vmax.f32 %v2881_v3, 0.0  ;;  %v2884_v20 = vadd.f32 %v2842_v5, %v3447_v10  ;;  %v2200_v6 = vpop.f32.mrb[29].mxu0 }
 0x267   :  { %v2268_v21 = vmax.f32 %v2883_v4, 0.0  ;;  %v2886_v22 = vadd.f32 %v3447_v10, %v2200_v6 }
 0x268   :  { %2285 = vst.msk [vmem:[%s3559_s9 + $0x58] sm:$0xff] %vm1715_vm4, %v2269_v19  ;;  %v2885_v23 = vadd.f32 %v2884_v20, %v3452_v27 }
 0x269   :  { %2284 = vst.msk [vmem:[%s3559_s9 + $0x50] sm:$0xff] %vm1715_vm4, %v2268_v21  ;;  %v2887_v24 = vadd.f32 %v2886_v22, %v3452_v27  ;;  %v2845_v8 = vpop.f32.mrb[30].mxu0 }
 0x26a   :  { %v2271_v49 = vmax.f32 %v2885_v23, 0.0  ;;  %v2888_v25 = vadd.f32 %v2845_v8, %v3447_v10  ;;  %v2210_v9 = vpop.f32.mrb[31].mxu0 }
 0x26b   :  { %v2270_v11 = vmax.f32 %v2887_v24, 0.0  ;;  %v2890_v13 = vadd.f32 %v3447_v10, %v2210_v9 }
 0x26c   :  { %2287 = vst.msk [vmem:[%s3559_s9 + $0x68] sm:$0xff] %vm1715_vm4, %v2271_v49  ;;  %v2889_v15 = vadd.f32 %v2888_v25, %v3452_v27 }
 0x26d   :  { %2286 = vst.msk [vmem:[%s3559_s9 + $0x60] sm:$0xff] %vm1715_vm4, %v2270_v11  ;;  %v2891_v17 = vadd.f32 %v2890_v13, %v3452_v27 }
 0x26e   :  { %v2273_v26 = vmax.f32 %v2889_v15, 0.0 }
 0x26f   :  { %v2272_v28 = vmax.f32 %v2891_v17, 0.0 }
 0x270   :  { %2289 = vst.msk [vmem:[%s3559_s9 + $0x78] sm:$0xff] %vm1715_vm4, %v2273_v26 }
 0x271   :  { %2288 = vst.msk [vmem:[%s3559_s9 + $0x70] sm:$0xff] %vm1715_vm4, %v2272_v28 }

</bundles_post_ra>
